<compile_context>
chip_gen: v7x
topology: tpu7x:2x2x1
jax: 0.10.0
libtpu: 0.0.40
codegen_flags: <defaults>
</compile_context>

<pallas_src>
import functools

import jax
import jax.numpy as jnp
from jax.experimental import pallas as pl
from jax.experimental.pallas import tpu as pltpu

P_DROP = 0.2
_KEEP_THRESH = int(P_DROP * (1 << 24))        # drop iff u24 < thresh
_INV_KEEP = 1.0 / (1.0 - P_DROP)

TM = 128          # batch tile (MXU-row aligned; safe for v5e/v6e/v7x VMEM)
K_PAD = 896       # 784 padded to 7*128
N1, N2 = 256, 128
N3P, N4P = 128, 128   # fc3 (64) and fc4 (10) outputs padded to full lane width
NUM_CLASSES = 10


def _to_i32(v):
    """Python int -> wrapped int32 constant."""
    v &= 0xFFFFFFFF
    if v >= (1 << 31):
        v -= 1 << 32
    return jnp.int32(v)


def _dropout(h, salt):
    """Counter-based dropout mask (murmur-style 32-bit mixer), train mode only.

    Uses only integer VPU ops so it lowers on Mosaic AND in interpret mode
    (replaces the pltpu hardware PRNG that failed to lower on CPU interpret).
    """
    shape = h.shape
    r = jax.lax.broadcasted_iota(jnp.int32, shape, 0)
    c = jax.lax.broadcasted_iota(jnp.int32, shape, 1)
    x = r * _to_i32(0x9E3779B1) + c * _to_i32(0x85EBCA77) + salt
    x = x ^ jax.lax.shift_right_logical(x, 16)
    x = x * _to_i32(0x7FEB352D)
    x = x ^ jax.lax.shift_right_logical(x, 15)
    x = x * _to_i32(0x846CA68B)
    x = x ^ jax.lax.shift_right_logical(x, 16)
    u24 = jnp.bitwise_and(x, jnp.int32(0x00FFFFFF))        # uniform in [0, 2^24)
    keep = (u24 >= jnp.int32(_KEEP_THRESH)).astype(jnp.float32)
    return h * (keep * jnp.float32(_INV_KEEP))


def classifier_kernel(*refs, training: bool):
    if training:
        seed_ref = refs[0]
        refs = refs[1:]
    (x_ref,
     w1_ref, b1_ref,
     w2_ref, b2_ref,
     w3_ref, b3_ref,
     w4_ref, b4_ref,
     out_ref) = refs

    if training:
        tile = pl.program_id(0)
        salt_base = seed_ref[0] * jnp.int32(1000003) + tile * jnp.int32(7919)

    def act(h, layer_idx):
        h = jnp.maximum(h, 0.0)
        if training:
            h = _dropout(h, salt_base + jnp.int32(layer_idx * 104729))
        return h

    x = x_ref[...]                                   # (TM, 896) bf16

    # fc1 + ReLU + dropout   (bf16 MXU operands, f32 accumulate/elementwise)
    h1 = jnp.dot(x, w1_ref[...], preferred_element_type=jnp.float32) + b1_ref[...]
    h1 = act(h1, 1)

    # fc2 + ReLU + dropout
    h2 = jnp.dot(h1.astype(jnp.bfloat16), w2_ref[...],
                 preferred_element_type=jnp.float32) + b2_ref[...]
    h2 = act(h2, 2)

    # fc3 + ReLU + dropout  (output padded to 128 lanes; padded lanes are 0)
    h3 = jnp.dot(h2.astype(jnp.bfloat16), w3_ref[...],
                 preferred_element_type=jnp.float32) + b3_ref[...]
    h3 = act(h3, 3)

    # fc4 (padded to 128 output lanes) + masked log_softmax over the 10 real classes
    logits = jnp.dot(h3.astype(jnp.bfloat16), w4_ref[...],
                     preferred_element_type=jnp.float32) + b4_ref[...]   # (TM, 128)
    col = jax.lax.broadcasted_iota(jnp.int32, logits.shape, 1)
    z = jnp.where(col < NUM_CLASSES, logits, jnp.float32(-1e30))
    m = jnp.max(z, axis=-1, keepdims=True)
    zc = z - m
    lse = jnp.log(jnp.sum(jnp.exp(zc), axis=-1, keepdims=True))
    out_ref[...] = zc - lse          # lane-dense (TM, 128) store; wrapper slices [:, :10]


def classifier_forward(x_nchw, params, *, training=False, seed=0):
    """x_nchw: (B, 1, 28, 28) float32. Returns (B, 10) log-probabilities."""
    B = x_nchw.shape[0]
    x = x_nchw.reshape(B, -1).astype(jnp.float32)            # x.view(B, -1) -> (B, 784)
    B_pad = ((B + TM - 1) // TM) * TM
    x = jnp.pad(x, ((0, B_pad - B), (0, K_PAD - x.shape[1]))).astype(jnp.bfloat16)

    (w1, b1), (w2, b2), (w3, b3), (w4, b4) = params
    w1p = jnp.pad(w1, ((0, K_PAD - 784), (0, 0))).astype(jnp.bfloat16)        # (896, 256)
    w2p = w2.astype(jnp.bfloat16)                                             # (256, 128)
    w3p = jnp.pad(w3, ((0, 0), (0, N3P - 64))).astype(jnp.bfloat16)           # (128, 128)
    b3p = jnp.pad(b3, ((0, 0), (0, N3P - 64)))                                # (1, 128) f32
    w4p = jnp.pad(w4, ((0, N3P - 64), (0, N4P - NUM_CLASSES))).astype(jnp.bfloat16)  # (128,128)
    b4p = jnp.pad(b4, ((0, 0), (0, N4P - NUM_CLASSES)))                       # (1, 128) f32

    const = lambda *_: (0, 0)                 # weights/biases stay VMEM-resident
    row = lambda i, *_: (i, 0)                # batch-tiled x / out

    in_specs = [
        pl.BlockSpec((TM, K_PAD), row),
        pl.BlockSpec((K_PAD, N1), const), pl.BlockSpec((1, N1), const),
        pl.BlockSpec((N1, N2), const),    pl.BlockSpec((1, N2), const),
        pl.BlockSpec((N2, N3P), const),   pl.BlockSpec((1, N3P), const),
        pl.BlockSpec((N3P, N4P), const),  pl.BlockSpec((1, N4P), const),
    ]
    out_specs = pl.BlockSpec((TM, N4P), row)

    args = (x, w1p, b1, w2p, b2, w3p, b3p, w4p, b4p)
    num_prefetch = 0
    if training:
        args = (jnp.array([seed], dtype=jnp.int32),) + args
        num_prefetch = 1

    kernel = functools.partial(classifier_kernel, training=training)
    out = pl.pallas_call(
        kernel,
        out_shape=jax.ShapeDtypeStruct((B_pad, N4P), jnp.float32),
        grid_spec=pltpu.PrefetchScalarGridSpec(
            num_scalar_prefetch=num_prefetch,
            grid=(B_pad // TM,),
            in_specs=in_specs,
            out_specs=out_specs,
        ),
        compiler_params=pltpu.CompilerParams(
            dimension_semantics=("parallel",)),
    )(*args)
    return out[:B, :NUM_CLASSES]


def init_params(key):
    """PyTorch Linear-style uniform init; weights stored as (in, out) so the
    kernel computes y = x @ W + b (== PyTorch x @ W.T + b)."""
    dims = [(784, 256), (256, 128), (128, 64), (64, 10)]
    params = []
    for fan_in, fan_out in dims:
        key, kw, kb = jax.random.split(key, 3)
        bound = 1.0 / (fan_in ** 0.5)
        w = jax.random.uniform(kw, (fan_in, fan_out), jnp.float32, -bound, bound)
        b = jax.random.uniform(kb, (fan_out,), jnp.float32, -bound, bound)
        params.append((w, b.reshape(1, fan_out)))
    return params


def reference_forward(x_nchw, params):
    """Pure-JAX reference (eval mode) with the same bf16-in / f32-acc dots."""
    B = x_nchw.shape[0]
    h = x_nchw.reshape(B, -1).astype(jnp.float32)
    (w1, b1), (w2, b2), (w3, b3), (w4, b4) = params

    def lin(h, w, b):
        return jnp.dot(h.astype(jnp.bfloat16), w.astype(jnp.bfloat16),
                       preferred_element_type=jnp.float32) + b

    h = jnp.maximum(lin(h, w1, b1), 0.0)
    h = jnp.maximum(lin(h, w2, b2), 0.0)
    h = jnp.maximum(lin(h, w3, b3), 0.0)
    logits = lin(h, w4, b4)
    return jax.nn.log_softmax(logits, axis=1)


if __name__ == "__main__":
    key = jax.random.PRNGKey(0)
    key, kx = jax.random.split(key)
    params = init_params(key)

    # Small batch (single grid tile), eval mode (dropout = identity, as model.eval()).
    B = 8
    x = jax.random.normal(kx, (B, 1, 28, 28), dtype=jnp.float32)   # NCHW
    out = jax.block_until_ready(classifier_forward(x, params, training=False))
    ref = reference_forward(x, params)
    assert out.shape == (B, NUM_CLASSES)
    assert jnp.allclose(out, ref, atol=2e-3, rtol=2e-3), (
        "mismatch vs reference, max err = "
        f"{float(jnp.max(jnp.abs(out - ref)))}")

    # Larger batch to exercise the multi-tile batch grid (+ padding path).
    key, kx2 = jax.random.split(key)
    B2 = 200
    x2 = jax.random.normal(kx2, (B2, 1, 28, 28), dtype=jnp.float32)
    out2 = jax.block_until_ready(classifier_forward(x2, params, training=False))
    ref2 = reference_forward(x2, params)
    assert out2.shape == (B2, NUM_CLASSES)
    assert jnp.allclose(out2, ref2, atol=2e-3, rtol=2e-3)

    # Training path: in-kernel (hash-based) dropout.
    out_t = jax.block_until_ready(
        classifier_forward(x, params, training=True, seed=42))
    assert out_t.shape == (B, NUM_CLASSES)
    assert bool(jnp.all(jnp.isfinite(out_t)))

    print("KERNEL_OK")
</pallas_src>

<mosaic_0001>
module attributes {stable_mosaic.version = 11 : i64} {
  func.func @classifier_kernel(%arg0: i32, %arg1: memref<128x896xbf16, #tpu.memory_space<vmem>>, %arg2: memref<896x256xbf16, #tpu.memory_space<vmem>>, %arg3: memref<1x256xf32, #tpu.memory_space<vmem>>, %arg4: memref<256x128xbf16, #tpu.memory_space<vmem>>, %arg5: memref<1x128xf32, #tpu.memory_space<vmem>>, %arg6: memref<128x128xbf16, #tpu.memory_space<vmem>>, %arg7: memref<1x128xf32, #tpu.memory_space<vmem>>, %arg8: memref<128x128xbf16, #tpu.memory_space<vmem>>, %arg9: memref<1x128xf32, #tpu.memory_space<vmem>>, %arg10: memref<128x128xf32, #tpu.memory_space<vmem>>) attributes {dimension_semantics = [#tpu.dimension_semantics<parallel>], iteration_bounds = array<i64: 1>, scalar_prefetch = 0 : i64, scratch_operands = 0 : i64, tpu.core_type = #tpu.core_type<tc>, window_params = [{transform_indices = @transform_0, window_bounds = array<i64: 128, 896>}, {pipeline_mode = #tpu.pipeline_mode<synchronous>, transform_indices = @transform_1, window_bounds = array<i64: 896, 256>}, {pipeline_mode = #tpu.pipeline_mode<synchronous>, transform_indices = @transform_2, window_bounds = array<i64: 1, 256>}, {pipeline_mode = #tpu.pipeline_mode<synchronous>, transform_indices = @transform_3, window_bounds = array<i64: 256, 128>}, {pipeline_mode = #tpu.pipeline_mode<synchronous>, transform_indices = @transform_4, window_bounds = array<i64: 1, 128>}, {pipeline_mode = #tpu.pipeline_mode<synchronous>, transform_indices = @transform_5, window_bounds = array<i64: 128, 128>}, {pipeline_mode = #tpu.pipeline_mode<synchronous>, transform_indices = @transform_6, window_bounds = array<i64: 1, 128>}, {pipeline_mode = #tpu.pipeline_mode<synchronous>, transform_indices = @transform_7, window_bounds = array<i64: 128, 128>}, {pipeline_mode = #tpu.pipeline_mode<synchronous>, transform_indices = @transform_8, window_bounds = array<i64: 1, 128>}, {transform_indices = @transform_9, window_bounds = array<i64: 128, 128>}]} {
    %c0 = arith.constant 0 : index
    %c0_0 = arith.constant 0 : index
    %0 = vector.load %arg1[%c0, %c0_0] : memref<128x896xbf16, #tpu.memory_space<vmem>>, vector<128x896xbf16>
    %c0_1 = arith.constant 0 : index
    %c0_2 = arith.constant 0 : index
    %1 = vector.load %arg2[%c0_1, %c0_2] : memref<896x256xbf16, #tpu.memory_space<vmem>>, vector<896x256xbf16>
    %cst = arith.constant dense<0.000000e+00> : vector<128x256xf32>
    %2 = tpu.matmul %0, %1, %cst {dimension_numbers = #tpu.dot_dimension_numbers<[1], [0], [0], [1], [0, 0, 1, 1], [], []>} : vector<128x896xbf16>, vector<896x256xbf16>, vector<128x256xf32> -> vector<128x256xf32>
    %c0_3 = arith.constant 0 : index
    %c0_4 = arith.constant 0 : index
    %3 = vector.load %arg3[%c0_3, %c0_4] : memref<1x256xf32, #tpu.memory_space<vmem>>, vector<1x256xf32>
    %4 = vector.broadcast %3 : vector<1x256xf32> to vector<128x256xf32>
    %5 = arith.addf %2, %4 : vector<128x256xf32>
    %cst_5 = arith.constant 0.000000e+00 : f32
    %6 = vector.broadcast %cst_5 : f32 to vector<128x256xf32>
    %7 = arith.maximumf %5, %6 : vector<128x256xf32>
    %8 = arith.truncf %7 : vector<128x256xf32> to vector<128x256xbf16>
    %c0_6 = arith.constant 0 : index
    %c0_7 = arith.constant 0 : index
    %9 = vector.load %arg4[%c0_6, %c0_7] : memref<256x128xbf16, #tpu.memory_space<vmem>>, vector<256x128xbf16>
    %cst_8 = arith.constant dense<0.000000e+00> : vector<128x128xf32>
    %10 = tpu.matmul %8, %9, %cst_8 {dimension_numbers = #tpu.dot_dimension_numbers<[1], [0], [0], [1], [0, 0, 1, 1], [], []>} : vector<128x256xbf16>, vector<256x128xbf16>, vector<128x128xf32> -> vector<128x128xf32>
    %c0_9 = arith.constant 0 : index
    %c0_10 = arith.constant 0 : index
    %11 = vector.load %arg5[%c0_9, %c0_10] : memref<1x128xf32, #tpu.memory_space<vmem>>, vector<1x128xf32>
    %12 = vector.broadcast %11 : vector<1x128xf32> to vector<128x128xf32>
    %13 = arith.addf %10, %12 : vector<128x128xf32>
    %cst_11 = arith.constant 0.000000e+00 : f32
    %14 = vector.broadcast %cst_11 : f32 to vector<128x128xf32>
    %15 = arith.maximumf %13, %14 : vector<128x128xf32>
    %16 = arith.truncf %15 : vector<128x128xf32> to vector<128x128xbf16>
    %c0_12 = arith.constant 0 : index
    %c0_13 = arith.constant 0 : index
    %17 = vector.load %arg6[%c0_12, %c0_13] : memref<128x128xbf16, #tpu.memory_space<vmem>>, vector<128x128xbf16>
    %cst_14 = arith.constant dense<0.000000e+00> : vector<128x128xf32>
    %18 = tpu.matmul %16, %17, %cst_14 {dimension_numbers = #tpu.dot_dimension_numbers<[1], [0], [0], [1], [0, 0, 1, 1], [], []>} : vector<128x128xbf16>, vector<128x128xbf16>, vector<128x128xf32> -> vector<128x128xf32>
    %c0_15 = arith.constant 0 : index
    %c0_16 = arith.constant 0 : index
    %19 = vector.load %arg7[%c0_15, %c0_16] : memref<1x128xf32, #tpu.memory_space<vmem>>, vector<1x128xf32>
    %20 = vector.broadcast %19 : vector<1x128xf32> to vector<128x128xf32>
    %21 = arith.addf %18, %20 : vector<128x128xf32>
    %cst_17 = arith.constant 0.000000e+00 : f32
    %22 = vector.broadcast %cst_17 : f32 to vector<128x128xf32>
    %23 = arith.maximumf %21, %22 : vector<128x128xf32>
    %24 = arith.truncf %23 : vector<128x128xf32> to vector<128x128xbf16>
    %c0_18 = arith.constant 0 : index
    %c0_19 = arith.constant 0 : index
    %25 = vector.load %arg8[%c0_18, %c0_19] : memref<128x128xbf16, #tpu.memory_space<vmem>>, vector<128x128xbf16>
    %cst_20 = arith.constant dense<0.000000e+00> : vector<128x128xf32>
    %26 = tpu.matmul %24, %25, %cst_20 {dimension_numbers = #tpu.dot_dimension_numbers<[1], [0], [0], [1], [0, 0, 1, 1], [], []>} : vector<128x128xbf16>, vector<128x128xbf16>, vector<128x128xf32> -> vector<128x128xf32>
    %c0_21 = arith.constant 0 : index
    %c0_22 = arith.constant 0 : index
    %27 = vector.load %arg9[%c0_21, %c0_22] : memref<1x128xf32, #tpu.memory_space<vmem>>, vector<1x128xf32>
    %28 = vector.broadcast %27 : vector<1x128xf32> to vector<128x128xf32>
    %29 = arith.addf %26, %28 : vector<128x128xf32>
    %30 = tpu.iota {dimensions = array<i32: 1>} : vector<128x128xi32>
    %c10_i32 = arith.constant 10 : i32
    %31 = vector.broadcast %c10_i32 : i32 to vector<128x128xi32>
    %32 = arith.cmpi slt, %30, %31 : vector<128x128xi32>
    %cst_23 = arith.constant -1.000000e+30 : f32
    %33 = vector.broadcast %cst_23 : f32 to vector<128x128xf32>
    %34 = arith.select %32, %29, %33 : vector<128x128xi1>, vector<128x128xf32>
    %cst_24 = arith.constant dense<0xFF800000> : vector<128xf32>
    %35 = vector.multi_reduction <maximumf>, %34, %cst_24 [1] : vector<128x128xf32> to vector<128xf32>
    %36 = vector.shape_cast %35 : vector<128xf32> to vector<128x1xf32>
    %37 = vector.broadcast %36 : vector<128x1xf32> to vector<128x128xf32>
    %38 = arith.subf %34, %37 : vector<128x128xf32>
    %39 = math.exp %38 : vector<128x128xf32>
    %cst_25 = arith.constant dense<0.000000e+00> : vector<128xf32>
    %40 = vector.multi_reduction <add>, %39, %cst_25 [1] : vector<128x128xf32> to vector<128xf32>
    %41 = vector.shape_cast %40 : vector<128xf32> to vector<128x1xf32>
    %42 = math.log %41 : vector<128x1xf32>
    %43 = vector.broadcast %42 : vector<128x1xf32> to vector<128x128xf32>
    %44 = arith.subf %38, %43 : vector<128x128xf32>
    %c0_26 = arith.constant 0 : index
    %c0_27 = arith.constant 0 : index
    %45 = vector.load %arg10[%c0_26, %c0_27] : memref<128x128xf32, #tpu.memory_space<vmem>>, vector<128x128xf32>
    tpu.vector_store %arg10[%c0_26, %c0_27], %44 {strides = array<i32>} : memref<128x128xf32, #tpu.memory_space<vmem>>, vector<128x128xf32>,
    return
  }
  func.func @transform_0(%arg0: i32) -> (i32, i32) {
    %c0_i32 = arith.constant 0 : i32
    %c0_i32_0 = arith.constant 0 : i32
    return %arg0, %c0_i32 : i32, i32
  }
  func.func @transform_1(%arg0: i32) -> (i32, i32) {
    %c0_i32 = arith.constant 0 : i32
    %c0_i32_0 = arith.constant 0 : i32
    %c0_i32_1 = arith.constant 0 : i32
    return %c0_i32, %c0_i32_0 : i32, i32
  }
  func.func @transform_2(%arg0: i32) -> (i32, i32) {
    %c0_i32 = arith.constant 0 : i32
    %c0_i32_0 = arith.constant 0 : i32
    %c0_i32_1 = arith.constant 0 : i32
    return %c0_i32, %c0_i32_0 : i32, i32
  }
  func.func @transform_3(%arg0: i32) -> (i32, i32) {
    %c0_i32 = arith.constant 0 : i32
    %c0_i32_0 = arith.constant 0 : i32
    %c0_i32_1 = arith.constant 0 : i32
    return %c0_i32, %c0_i32_0 : i32, i32
  }
  func.func @transform_4(%arg0: i32) -> (i32, i32) {
    %c0_i32 = arith.constant 0 : i32
    %c0_i32_0 = arith.constant 0 : i32
    %c0_i32_1 = arith.constant 0 : i32
    return %c0_i32, %c0_i32_0 : i32, i32
  }
  func.func @transform_5(%arg0: i32) -> (i32, i32) {
    %c0_i32 = arith.constant 0 : i32
    %c0_i32_0 = arith.constant 0 : i32
    %c0_i32_1 = arith.constant 0 : i32
    return %c0_i32, %c0_i32_0 : i32, i32
  }
  func.func @transform_6(%arg0: i32) -> (i32, i32) {
    %c0_i32 = arith.constant 0 : i32
    %c0_i32_0 = arith.constant 0 : i32
    %c0_i32_1 = arith.constant 0 : i32
    return %c0_i32, %c0_i32_0 : i32, i32
  }
  func.func @transform_7(%arg0: i32) -> (i32, i32) {
    %c0_i32 = arith.constant 0 : i32
    %c0_i32_0 = arith.constant 0 : i32
    %c0_i32_1 = arith.constant 0 : i32
    return %c0_i32, %c0_i32_0 : i32, i32
  }
  func.func @transform_8(%arg0: i32) -> (i32, i32) {
    %c0_i32 = arith.constant 0 : i32
    %c0_i32_0 = arith.constant 0 : i32
    %c0_i32_1 = arith.constant 0 : i32
    return %c0_i32, %c0_i32_0 : i32, i32
  }
  func.func @transform_9(%arg0: i32) -> (i32, i32) {
    %c0_i32 = arith.constant 0 : i32
    %c0_i32_0 = arith.constant 0 : i32
    return %arg0, %c0_i32 : i32, i32
  }
}

</mosaic_0001>

<bundles_post_ra>
// kernel: tpu_custom_call.1
= control target key start
LH: loop header
LB: loop body
LE: loop exit
PB: predicated region body
PF: predicated region fallthrough
CT: control target
= control target key end

     0   :  { %14 = vsyncpa [#allocation3], 0  ;;  %s3889_s0 = inlined_call_operand.hbm [shape: bf16[128,896], index: 0, kind: input, shape index: {}]   ;;  %s3890_s1 = inlined_call_operand.hbm [shape: bf16[896,256], index: 1, kind: input, shape index: {}]   ;;  %s3891_s2 = inlined_call_operand.vmem [shape: f32[1,256], index: 2, kind: input, shape index: {}]   ;;  %s3892_s3 = inlined_call_operand.hbm [shape: bf16[256,128], index: 3, kind: input, shape index: {}]   ;;  %s3893_s4 = inlined_call_operand.vmem [shape: f32[1,128], index: 4, kind: input, shape index: {}]   ;;  %s3894_s5 = inlined_call_operand.hbm [shape: bf16[128,128], index: 5, kind: input, shape index: {}]   ;;  %s3895_s6 = inlined_call_operand.vmem [shape: f32[1,128], index: 6, kind: input, shape index: {}]   ;;  %s3896_s7 = inlined_call_operand.hbm [shape: bf16[128,128], index: 7, kind: input, shape index: {}]   ;;  %s3897_s8 = inlined_call_operand.vmem [shape: f32[1,128], index: 8, kind: input, shape index: {}]   ;;  %s3898_s9 = inlined_call_operand.hbm [shape: f32[128,128], index: 9, kind: output, shape index: {}]  }
   0x1   :  { %15 = vsyncpa [#allocation6], 0 }
   0x2   :  { %16 = vsyncpa [#allocation9], 0 }
   0x3   :  { %17 = vsyncpa [#allocation4], 0  ;;  %s3456_s30 = smov [#allocation5]   ;;  %s3316_s13 = scalar_lea.hbm %s3890_s1, 14336 }
   0x4   :  { %s35_s10 = sshll.u32 %s3456_s30, 4  ;;  %p3317_p0 = scmp.ne.s32.totalorder %s3890_s1, %s3316_s13  ;;  %s36_s10 = int_to_ptr.vmem [resolvable:$true] %s35_s10 }
   0x5   :  { %p3320_p1 = scmp.lt.u32.totalorder %s3316_s13, %s3890_s1 }
   0x7   :  { %p3322_p2 = pnand %p3320_p1, %p3317_p0 }
   0x9   :  { %3325 = shalt.err (!%p3322_p2)
}
   0xa   :  { %s3326_s18 = scalar_lea.vmem %s36_s10, 14336  ;;  %p3331_p4 = scmp.lt.s32.totalorder %s36_s10, %s36_s10 }
   0xb   :  { %p3327_p3 = scmp.ne.s32.totalorder %s36_s10, %s3326_s18  ;;  %p3332_p5 = scmp.lt.s32.totalorder %s3326_s18, %s3326_s18 }
   0xd   :  { %p3333_p6 = por %p3332_p5, %p3331_p4 }
   0xf   :  { %p3334_p7 = pnand %p3333_p6, %p3327_p3 }
  0x11   :  { %3337 = shalt.err (!%p3334_p7)
}
  0x12   :  { %s3457_s19 = smov 128   ;;  %s3458_s20 = smov 8  }
  0x13   :  { %41 = dma.hbm_to_vmem [thread:$0]  %s3890_s1, 14336, %s36_s10, [#allocation6], %s3457_s19, %s3457_s19, %s3458_s20  }
  0x14   :  { %s3459_s23 = smov [#allocation8]   ;;  %s3460_s25 = smov [#allocation2]  }
  0x15   :  { %s63_s24 = sshll.u32 %s3459_s23, 4  ;;  %s23_s26 = sshll.u32 %s3460_s25, 4  ;;  %s64_s24 = int_to_ptr.vmem [resolvable:$true] %s63_s24  ;;  %s24_s26 = int_to_ptr.vmem [resolvable:$true] %s23_s26 }
  0x16   :  { %s3338_s29 = scalar_lea.hbm %s3894_s5, 1024 }
  0x17   :  { %p3339_p8 = scmp.ne.s32.totalorder %s3894_s5, %s3338_s29  ;;  %p3342_p9 = scmp.lt.u32.totalorder %s3338_s29, %s3894_s5 }
  0x19   :  { %p3344_p10 = pnand %p3342_p9, %p3339_p8 }
  0x1b   :  { %3347 = shalt.err (!%p3344_p10)
}
  0x1c   :  { %s3348_s1 = scalar_lea.vmem %s64_s24, 1024  ;;  %p3353_p12 = scmp.lt.s32.totalorder %s64_s24, %s64_s24 }
  0x1d   :  { %p3349_p11 = scmp.ne.s32.totalorder %s64_s24, %s3348_s1  ;;  %p3354_p13 = scmp.lt.s32.totalorder %s3348_s1, %s3348_s1 }
  0x1f   :  { %p3355_p0 = por %p3354_p13, %p3353_p12 }
  0x21   :  { %p3356_p1 = pnand %p3355_p0, %p3349_p11 }
  0x23   :  { %3359 = shalt.err (!%p3356_p1)
}
  0x24   :  { %s3461_s10 = smov 64   ;;  %s3462_s14 = smov 4  }
  0x25   :  { %69 = dma.hbm_to_vmem [thread:$0]  %s3894_s5, 1024, %s64_s24, [#allocation9], %s3461_s10, %s3461_s10, %s3462_s14  }
  0x26   :  { %s3360_s21 = scalar_lea.hbm %s3889_s0, 7168 }
  0x27   :  { %p3361_p2 = scmp.ne.s32.totalorder %s3889_s0, %s3360_s21  ;;  %p3364_p3 = scmp.lt.u32.totalorder %s3360_s21, %s3889_s0 }
  0x29   :  { %p3366_p4 = pnand %p3364_p3, %p3361_p2 }
  0x2b   :  { %3369 = shalt.err (!%p3366_p4)
}
  0x2c   :  { %s3370_s28 = scalar_lea.vmem %s24_s26, 7168  ;;  %p3375_p6 = scmp.lt.s32.totalorder %s24_s26, %s24_s26 }
  0x2d   :  { %p3371_p5 = scmp.ne.s32.totalorder %s24_s26, %s3370_s28  ;;  %p3376_p7 = scmp.lt.s32.totalorder %s3370_s28, %s3370_s28 }
  0x2f   :  { %p3377_p8 = por %p3376_p7, %p3375_p6 }
  0x31   :  { %p3378_p9 = pnand %p3377_p8, %p3371_p5 }
  0x33   :  { %3381 = shalt.err (!%p3378_p9)
}
  0x34   :  { %s3463_s5 = smov 448   ;;  %s3464_s24 = smov 28  }
  0x35   :  { %29 = dma.hbm_to_vmem [thread:$0]  %s3889_s0, 7168, %s24_s26, [#allocation3], %s3463_s5, %s3463_s5, %s3464_s24  }
  0x36   :  { %s3465_s11 = smov [#allocation7]   ;;  %s3466_s13 = smov [#allocation10]  }
  0x37   :  { %s49_s12 = sshll.u32 %s3465_s11, 4  ;;  %s77_s1 = sshll.u32 %s3466_s13, 4  ;;  %s50_s12 = int_to_ptr.vmem [resolvable:$true] %s49_s12  ;;  %s78_s1 = int_to_ptr.vmem [resolvable:$true] %s77_s1 }
  0x38   :  { %s3382_s17 = scalar_lea.hbm %s3892_s3, 2048 }
  0x39   :  { %p3383_p10 = scmp.ne.s32.totalorder %s3892_s3, %s3382_s17  ;;  %p3386_p11 = scmp.lt.u32.totalorder %s3382_s17, %s3892_s3 }
  0x3b   :  { %p3388_p12 = pnand %p3386_p11, %p3383_p10 }
  0x3d   :  { %3391 = shalt.err (!%p3388_p12)
}
  0x3e   :  { %s3392_s0 = scalar_lea.vmem %s50_s12, 2048  ;;  %p3397_p0 = scmp.lt.s32.totalorder %s50_s12, %s50_s12 }
  0x3f   :  { %p3393_p13 = scmp.ne.s32.totalorder %s50_s12, %s3392_s0  ;;  %p3398_p1 = scmp.lt.s32.totalorder %s3392_s0, %s3392_s0 }
  0x41   :  { %p3399_p2 = por %p3398_p1, %p3397_p0 }
  0x43   :  { %p3400_p3 = pnand %p3399_p2, %p3393_p13 }
  0x45   :  { %3403 = shalt.err (!%p3400_p3)
}
  0x46   :  { %55 = dma.hbm_to_vmem [thread:$0]  %s3892_s3, 2048, %s50_s12, [#allocation6], %s3461_s10, %s3461_s10, %s3462_s14  }
  0x47   :  { %s3404_s5 = scalar_lea.hbm %s3896_s7, 1024 }
  0x48   :  { %p3405_p4 = scmp.ne.s32.totalorder %s3896_s7, %s3404_s5  ;;  %p3408_p5 = scmp.lt.u32.totalorder %s3404_s5, %s3896_s7 }
  0x4a   :  { %p3410_p6 = pnand %p3408_p5, %p3405_p4 }
  0x4c   :  { %3413 = shalt.err (!%p3410_p6)
}
  0x4d   :  { %s3414_s13 = scalar_lea.vmem %s78_s1, 1024  ;;  %p3419_p8 = scmp.lt.s32.totalorder %s78_s1, %s78_s1 }
  0x4e   :  { %p3415_p7 = scmp.ne.s32.totalorder %s78_s1, %s3414_s13  ;;  %p3420_p9 = scmp.lt.s32.totalorder %s3414_s13, %s3414_s13 }
  0x50   :  { %p3421_p10 = por %p3420_p9, %p3419_p8 }
  0x52   :  { %p3422_p11 = pnand %p3421_p10, %p3415_p7 }
  0x54   :  { %3425 = shalt.err (!%p3422_p11)
}
  0x55   :  { %83 = dma.hbm_to_vmem [thread:$0]  %s3896_s7, 1024, %s78_s1, [#allocation9], %s3461_s10, %s3461_s10, %s3462_s14  }
  0x56   :  { %3448 = dma.done.wait [#allocation3], 7168  }
  0x57   :  { %3449 = vsyncadd [#allocation3], 4294960128 }
  0x58   :  { %3450 = dma.done.wait [#allocation6], 16384  }
  0x59   :  { %3451 = vsyncadd [#allocation6], 4294950912 }
  0x5a   :  { %3452 = dma.done.wait [#allocation9], 2048  }
  0x5b   :  { %3453 = vsyncadd [#allocation9], 4294965248  ;;  %v2972_v0 = vld [vmem:[#allocation5 + $0x104] ss:$8 sps:$4 sm:$0xff]   ;;  %v2974_v1 = vld [vmem:[#allocation5 + $0x100] ss:$8 sps:$4 sm:$0xff]  }
  0x5c   :  { %1251 = vmatprep.subr.bf16.mxu0 %v2972_v0  ;;  %v2975_v2 = vld [vmem:[#allocation5 + $0x114] ss:$8 sps:$4 sm:$0xff]   ;;  %v2977_v3 = vld [vmem:[#allocation5 + $0x110] ss:$8 sps:$4 sm:$0xff]   ;;  %v2978_v4 = vld [vmem:[#allocation5 + $0x124] ss:$8 sps:$4 sm:$0xff]  }
  0x5d   :  { %1252 = vmatpush1.bf16.msra.mxu0 %v2974_v1  ;;  %v2980_v5 = vld [vmem:[#allocation5 + $0x120] ss:$8 sps:$4 sm:$0xff]   ;;  %v2981_v6 = vld [vmem:[#allocation5 + $0x134] ss:$8 sps:$4 sm:$0xff]   ;;  %v2983_v7 = vld [vmem:[#allocation5 + $0x130] ss:$8 sps:$4 sm:$0xff]  }
  0x5e   :  { %1253 = vmatprep.subr.bf16.mxu0 %v2975_v2  ;;  %v2984_v8 = vld [vmem:[#allocation5 + $0x144] ss:$8 sps:$4 sm:$0xff]   ;;  %v2986_v9 = vld [vmem:[#allocation5 + $0x140] ss:$8 sps:$4 sm:$0xff]   ;;  %v2987_v10 = vld [vmem:[#allocation5 + $0x154] ss:$8 sps:$4 sm:$0xff]  }
  0x5f   :  { %v2989_v11 = vld [vmem:[#allocation5 + $0x150] ss:$8 sps:$4 sm:$0xff]   ;;  %v2990_v12 = vld [vmem:[#allocation5 + $0x164] ss:$8 sps:$4 sm:$0xff]   ;;  %v2992_v14 = vld [vmem:[#allocation5 + $0x160] ss:$8 sps:$4 sm:$0xff]  }
  0x60   :  { %v3022_v13 = vld [vmem:[#allocation2 + $0xc] ss:$28 sps:$4 sm:$0xff]   ;;  %v2993_v15 = vld [vmem:[#allocation5 + $0x174] ss:$8 sps:$4 sm:$0xff]   ;;  %v2995_v16 = vld [vmem:[#allocation5 + $0x170] ss:$8 sps:$4 sm:$0xff]  }
  0x61   :  { %1254 = vmatpush1.bf16.msra.mxu0 %v2977_v3  ;;  %1283 = vmatprep.mubr.bf16.mxu0 %v3022_v13  ;;  %v2996_v17 = vld [vmem:[#allocation5 + $0x184] ss:$8 sps:$4 sm:$0xff]   ;;  %v2998_v18 = vld [vmem:[#allocation5 + $0x180] ss:$8 sps:$4 sm:$0xff]   ;;  %v2999_v19 = vld [vmem:[#allocation5 + $0x194] ss:$8 sps:$4 sm:$0xff]  }
  0x62   :  { %1255 = vmatprep.subr.bf16.mxu0 %v2978_v4  ;;  %v3001_v20 = vld [vmem:[#allocation5 + $0x190] ss:$8 sps:$4 sm:$0xff]   ;;  %v3002_v21 = vld [vmem:[#allocation5 + $0x1a4] ss:$8 sps:$4 sm:$0xff]   ;;  %v3004_v22 = vld [vmem:[#allocation5 + $0x1a0] ss:$8 sps:$4 sm:$0xff]  }
  0x63   :  { %v3005_v23 = vld [vmem:[#allocation5 + $0x1b4] ss:$8 sps:$4 sm:$0xff]   ;;  %v3007_v24 = vld [vmem:[#allocation5 + $0x1b0] ss:$8 sps:$4 sm:$0xff]   ;;  %v3008_v25 = vld [vmem:[#allocation5 + $0x1c4] ss:$8 sps:$4 sm:$0xff]  }
  0x64   :  { %v3010_v26 = vld [vmem:[#allocation5 + $0x1c0] ss:$8 sps:$4 sm:$0xff]   ;;  %v3011_v27 = vld [vmem:[#allocation5 + $0x1d4] ss:$8 sps:$4 sm:$0xff]   ;;  %v3013_v28 = vld [vmem:[#allocation5 + $0x1d0] ss:$8 sps:$4 sm:$0xff]  }
  0x65   :  { %1256 = vmatpush1.bf16.msra.mxu0 %v2980_v5  ;;  %v3014_v29 = vld [vmem:[#allocation5 + $0x1e4] ss:$8 sps:$4 sm:$0xff]   ;;  %v3094_v31 = vld [vmem:[#allocation5] ss:$8 sps:$4 sm:$0xff]   ;;  %v3017_v33 = vld [vmem:[#allocation5 + $0x1f4] ss:$8 sps:$4 sm:$0xff]  }
  0x66   :  { %1257 = vmatprep.subr.bf16.mxu0 %v2981_v6  ;;  %v3089_v30 = vld [vmem:[#allocation5 + $0x4] ss:$8 sps:$4 sm:$0xff]   ;;  %v3016_v32 = vld [vmem:[#allocation5 + $0x1e0] ss:$8 sps:$4 sm:$0xff]   ;;  %v3098_v34 = vld [vmem:[#allocation5 + $0x14] ss:$8 sps:$4 sm:$0xff]  }
  0x67   :  { %1138 = vmatprep.subr.bf16.mxu1 %v3089_v30  ;;  %v3019_v35 = vld [vmem:[#allocation5 + $0x1f0] ss:$8 sps:$4 sm:$0xff]   ;;  %v3025_v37 = vld [vmem:[#allocation5 + $0x204] ss:$8 sps:$4 sm:$0xff]   ;;  %v3106_v39 = vld [vmem:[#allocation5 + $0x20] ss:$8 sps:$4 sm:$0xff]  }
  0x68   :  { %1139 = vmatpush1.bf16.msra.mxu1 %v3094_v31  ;;  %v3103_v36 = vld [vmem:[#allocation5 + $0x10] ss:$8 sps:$4 sm:$0xff]   ;;  %v3104_v38 = vld [vmem:[#allocation5 + $0x24] ss:$8 sps:$4 sm:$0xff]   ;;  %v3109_v40 = vld [vmem:[#allocation5 + $0x34] ss:$8 sps:$4 sm:$0xff]  }
  0x69   :  { %1258 = vmatpush1.bf16.msra.mxu0 %v2983_v7  ;;  %1140 = vmatprep.subr.bf16.mxu1 %v3098_v34  ;;  %v3020_v41 = vld [vmem:[#allocation2 + $0x8] ss:$28 sps:$4 sm:$0xff]   ;;  %v3028_v43 = vld [vmem:[#allocation5 + $0x214] ss:$8 sps:$4 sm:$0xff]   ;;  %v3115_v45 = vld [vmem:[#allocation5 + $0x30] ss:$8 sps:$4 sm:$0xff]  }
  0x6a   :  { %1259 = vmatprep.subr.bf16.mxu0 %v2984_v8  ;;  %v3023_v42 = vld [vmem:[#allocation5 + $0x200] ss:$8 sps:$4 sm:$0xff]   ;;  %v3116_v46 = vld [vmem:[#allocation5 + $0x44] ss:$8 sps:$4 sm:$0xff]   ;;  %v3026_v47 = vld [vmem:[#allocation5 + $0x210] ss:$8 sps:$4 sm:$0xff]  }
  0x6b   :  { %v3029_v44 = vld [vmem:[#allocation2 + $0x44] ss:$28 sps:$4 sm:$0xff]   ;;  %v3121_v50 = vld [vmem:[#allocation5 + $0x54] ss:$8 sps:$4 sm:$0xff]   ;;  %v3127_v55 = vld [vmem:[#allocation5 + $0x50] ss:$8 sps:$4 sm:$0xff]  }
  0x6c   :  { %1141 = vmatpush1.bf16.msra.mxu1 %v3103_v36  ;;  %v3034_v48 = vld [vmem:[#allocation5 + $0x224] ss:$8 sps:$4 sm:$0xff]   ;;  %v3118_v49 = vld [vmem:[#allocation5 + $0x40] ss:$8 sps:$4 sm:$0xff]   ;;  %v3038_v53 = vld [vmem:[#allocation2 + $0x7c] ss:$28 sps:$4 sm:$0xff]  }
  0x6d   :  { %1260 = vmatpush1.bf16.msra.mxu0 %v2986_v9  ;;  %1142 = vmatprep.subr.bf16.mxu1 %v3104_v38  ;;  %v3031_v51 = vld [vmem:[#allocation2 + $0x40] ss:$28 sps:$4 sm:$0xff]   ;;  %v3128_v56 = vld [vmem:[#allocation5 + $0x64] ss:$8 sps:$4 sm:$0xff]   ;;  %v3035_v57 = vld [vmem:[#allocation5 + $0x230] ss:$8 sps:$4 sm:$0xff]  }
  0x6e   :  { %1261 = vmatprep.subr.bf16.mxu0 %v2987_v10  ;;  %v3032_v52 = vld [vmem:[#allocation5 + $0x220] ss:$8 sps:$4 sm:$0xff]   ;;  %v3037_v54 = vld [vmem:[#allocation5 + $0x234] ss:$8 sps:$4 sm:$0xff]   ;;  %v3043_v58 = vld [vmem:[#allocation5 + $0x244] ss:$8 sps:$4 sm:$0xff]  }
  0x6f   :  { %v3130_v59 = vld [vmem:[#allocation5 + $0x60] ss:$8 sps:$4 sm:$0xff]   ;;  %v3133_v60 = vld [vmem:[#allocation5 + $0x74] ss:$8 sps:$4 sm:$0xff]   ;;  %v3139_v1 = vld [vmem:[#allocation5 + $0x70] ss:$8 sps:$4 sm:$0xff]  }
  0x70   :  { %1143 = vmatpush1.bf16.msra.mxu1 %v3106_v39  ;;  %v3040_v61 = vld [vmem:[#allocation2 + $0x78] ss:$28 sps:$4 sm:$0xff]   ;;  %v3041_v62 = vld [vmem:[#allocation5 + $0x240] ss:$8 sps:$4 sm:$0xff]   ;;  %v3140_v2 = vld [vmem:[#allocation5 + $0x84] ss:$8 sps:$4 sm:$0xff]  }
  0x71   :  { %1262 = vmatpush1.bf16.msra.mxu0 %v2989_v11  ;;  %1144 = vmatprep.subr.bf16.mxu1 %v3109_v40  ;;  %v3046_v63 = vld [vmem:[#allocation5 + $0x254] ss:$8 sps:$4 sm:$0xff]   ;;  %v3044_v3 = vld [vmem:[#allocation5 + $0x250] ss:$8 sps:$4 sm:$0xff]   ;;  %v3052_v4 = vld [vmem:[#allocation5 + $0x264] ss:$8 sps:$4 sm:$0xff]  }
  0x72   :  { %1263 = vmatprep.subr.bf16.mxu0 %v2990_v12  ;;  %v3047_v0 = vld [vmem:[#allocation2 + $0xb4] ss:$28 sps:$4 sm:$0xff]   ;;  %v3142_v5 = vld [vmem:[#allocation5 + $0x80] ss:$8 sps:$4 sm:$0xff]   ;;  %v3152_v12 = vld [vmem:[#allocation5 + $0xa4] ss:$8 sps:$4 sm:$0xff]  }
  0x73   :  { %v3145_v6 = vld [vmem:[#allocation5 + $0x94] ss:$8 sps:$4 sm:$0xff]   ;;  %v3049_v7 = vld [vmem:[#allocation2 + $0xb0] ss:$28 sps:$4 sm:$0xff]   ;;  %v3050_v8 = vld [vmem:[#allocation5 + $0x260] ss:$8 sps:$4 sm:$0xff]  }
  0x74   :  { %1145 = vmatpush1.bf16.msra.mxu1 %v3115_v45  ;;  %v3056_v9 = vld [vmem:[#allocation2 + $0xec] ss:$28 sps:$4 sm:$0xff]   ;;  %v3055_v10 = vld [vmem:[#allocation5 + $0x274] ss:$8 sps:$4 sm:$0xff]   ;;  %v3151_v11 = vld [vmem:[#allocation5 + $0x90] ss:$8 sps:$4 sm:$0xff]  }
  0x75   :  { %1264 = vmatpush1.bf16.msra.mxu0 %v2992_v14  ;;  %1146 = vmatprep.subr.bf16.mxu1 %v3116_v46  ;;  %v3053_v13 = vld [vmem:[#allocation5 + $0x270] ss:$8 sps:$4 sm:$0xff]   ;;  %v3061_v14 = vld [vmem:[#allocation5 + $0x284] ss:$8 sps:$4 sm:$0xff]   ;;  %v3073_v30 = vld [vmem:[#allocation5 + $0x2b4] ss:$8 sps:$4 sm:$0xff]  }
  0x76   :  { %1265 = vmatprep.subr.bf16.mxu0 %v2993_v15  ;;  %v3058_v15 = vld [vmem:[#allocation2 + $0xe8] ss:$28 sps:$4 sm:$0xff]   ;;  %v3074_v31 = vld [vmem:[#allocation2 + $0x15c] ss:$28 sps:$4 sm:$0xff]  }
  0x77   :  { %v3071_v34 = vld [vmem:[#allocation5 + $0x2b0] ss:$8 sps:$4 sm:$0xff]   ;;  %v3079_v36 = vld [vmem:[#allocation5 + $0x2c4] ss:$8 sps:$4 sm:$0xff]   ;;  %v3077_v38 = vld [vmem:[#allocation5 + $0x2c0] ss:$8 sps:$4 sm:$0xff]  }
  0x78   :  { %1147 = vmatpush1.bf16.msra.mxu1 %v3118_v49  ;;  %v3181_v39 = vld [vmem:[#allocation5 + $0xf4] ss:$8 sps:$4 sm:$0xff]  }
  0x79   :  { %1266 = vmatpush1.bf16.msra.mxu0 %v2995_v16  ;;  %1148 = vmatprep.subr.bf16.mxu1 %v3121_v50  ;;  %v3154_v16 = vld [vmem:[#allocation5 + $0xa0] ss:$8 sps:$4 sm:$0xff]   ;;  %v3082_v40 = vld [vmem:[#allocation5 + $0x2d4] ss:$8 sps:$4 sm:$0xff]  }
  0x7a   :  { %1267 = vmatprep.subr.bf16.mxu0 %v2996_v17  ;;  %v3157_v17 = vld [vmem:[#allocation5 + $0xb4] ss:$8 sps:$4 sm:$0xff]  }
  0x7b   :  { %v3188_v45 = vld [vmem:[#allocation2] ss:$28 sps:$4 sm:$0xff]   ;;  %v3097_v49 = vld [vmem:[#allocation2 + $0x14] ss:$28 sps:$4 sm:$0xff]  }
  0x7c   :  { %1149 = vmatpush1.bf16.msra.mxu1 %v3127_v55  ;;  %v3192_v46 = vld [vmem:[#allocation2 + $0x3c] ss:$28 sps:$4 sm:$0xff]  }
  0x7d   :  { %1268 = vmatpush1.bf16.msra.mxu0 %v2998_v18  ;;  %1150 = vmatprep.subr.bf16.mxu1 %v3128_v56  ;;  %v3059_v18 = vld [vmem:[#allocation5 + $0x280] ss:$8 sps:$4 sm:$0xff]   ;;  %v3093_v50 = vld [vmem:[#allocation5 + $0x2f4] ss:$8 sps:$4 sm:$0xff]   ;;  %v3095_v56 = vld [vmem:[#allocation2 + $0x10] ss:$28 sps:$4 sm:$0xff]  }
  0x7e   :  { %1269 = vmatprep.subr.bf16.mxu0 %v2999_v19  ;;  %v3064_v19 = vld [vmem:[#allocation5 + $0x294] ss:$8 sps:$4 sm:$0xff]  }
  0x7f   :  { %v3194_v55 = vld [vmem:[#allocation2 + $0x38] ss:$28 sps:$4 sm:$0xff]  }
  0x80   :  { %1151 = vmatpush1.bf16.msra.mxu1 %v3130_v59  ;;  %v3100_v59 = vld [vmem:[#allocation5 + $0x300] ss:$8 sps:$4 sm:$0xff]  }
  0x81   :  { %1270 = vmatpush1.bf16.msra.mxu0 %v3001_v20  ;;  %1152 = vmatprep.subr.bf16.mxu1 %v3133_v60  ;;  %v3065_v20 = vld [vmem:[#allocation2 + $0x124] ss:$28 sps:$4 sm:$0xff]   ;;  %v3107_v60 = vld [vmem:[#allocation2 + $0x4c] ss:$28 sps:$4 sm:$0xff]  }
  0x82   :  { %1271 = vmatprep.subr.bf16.mxu0 %v3002_v21  ;;  %v3163_v21 = vld [vmem:[#allocation5 + $0xb0] ss:$8 sps:$4 sm:$0xff]  }
  0x84   :  { %1153 = vmatpush1.bf16.msra.mxu1 %v3139_v1  ;;  %v3226_v1 = vld [vmem:[#allocation7 + $0x58] sm:$0xff]  }
  0x85   :  { %1272 = vmatpush1.bf16.msra.mxu0 %v3004_v22  ;;  %1154 = vmatprep.subr.bf16.mxu1 %v3140_v2  ;;  %v3164_v22 = vld [vmem:[#allocation5 + $0xc4] ss:$8 sps:$4 sm:$0xff]   ;;  %v3112_v2 = vld [vmem:[#allocation5 + $0x310] ss:$8 sps:$4 sm:$0xff]  }
  0x86   :  { %1273 = vmatprep.subr.bf16.mxu0 %v3005_v23  ;;  %v3190_v23 = vld [vmem:[#allocation2 + $0x4] ss:$28 sps:$4 sm:$0xff]  }
  0x87   :  { %1170 = vmatprep.mubr.bf16.mxu1 %v3190_v23  ;;  %v3162_v23 = vld [vmem:[#allocation5 + $0x354] ss:$8 sps:$4 sm:$0xff]  }
  0x88   :  { %1155 = vmatpush1.bf16.msra.mxu1 %v3142_v5  ;;  %v3200_v5 = vld [vmem:[#allocation2 + $0xac] ss:$28 sps:$4 sm:$0xff]  }
  0x89   :  { %1274 = vmatpush1.bf16.msra.mxu0 %v3007_v24  ;;  %1156 = vmatprep.subr.bf16.mxu1 %v3145_v6  ;;  %v3062_v24 = vld [vmem:[#allocation5 + $0x290] ss:$8 sps:$4 sm:$0xff]  }
  0x8a   :  { %1275 = vmatprep.subr.bf16.mxu0 %v3008_v25  ;;  %v3070_v25 = vld [vmem:[#allocation5 + $0x2a4] ss:$8 sps:$4 sm:$0xff]   ;;  %v3227_v6 = vld [vmem:[#allocation7 + $0x18] sm:$0xff]  }
  0x8c   :  { %1157 = vmatpush1.bf16.msra.mxu1 %v3151_v11  ;;  %v3138_v11 = vld [vmem:[#allocation5 + $0x334] ss:$8 sps:$4 sm:$0xff]  }
  0x8d   :  { %1276 = vmatpush1.bf16.msra.mxu0 %v3010_v26  ;;  %1158 = vmatprep.subr.bf16.mxu1 %v3152_v12  ;;  %v3067_v26 = vld [vmem:[#allocation2 + $0x120] ss:$28 sps:$4 sm:$0xff]  }
  0x8e   :  { %1277 = vmatprep.subr.bf16.mxu0 %v3011_v27  ;;  %v3166_v27 = vld [vmem:[#allocation5 + $0xc0] ss:$8 sps:$4 sm:$0xff]  }
  0x8f   :  { %v3229_v12 = vld [vmem:[#allocation7 + $0x20] sm:$0xff]  }
  0x90   :  { %1159 = vmatpush1.bf16.msra.mxu1 %v3154_v16  ;;  %v3150_v16 = vld [vmem:[#allocation5 + $0x344] ss:$8 sps:$4 sm:$0xff]  }
  0x91   :  { %1278 = vmatpush1.bf16.msra.mxu0 %v3013_v28  ;;  %1160 = vmatprep.subr.bf16.mxu1 %v3157_v17  ;;  %v3068_v28 = vld [vmem:[#allocation5 + $0x2a0] ss:$8 sps:$4 sm:$0xff]  }
  0x92   :  { %1279 = vmatprep.subr.bf16.mxu0 %v3014_v29  ;;  %v3169_v29 = vld [vmem:[#allocation5 + $0xd4] ss:$8 sps:$4 sm:$0xff]   ;;  %v3204_v17 = vld [vmem:[#allocation2 + $0xe4] ss:$28 sps:$4 sm:$0xff]  }
  0x94   :  { %1161 = vmatpush1.bf16.msra.mxu1 %v3163_v21  ;;  %v3131_v21 = vld [vmem:[#allocation2 + $0xbc] ss:$28 sps:$4 sm:$0xff]  }
  0x95   :  { %1280 = vmatpush1.bf16.msra.mxu0 %v3016_v32  ;;  %1162 = vmatprep.subr.bf16.mxu1 %v3164_v22  ;;  %v3175_v32 = vld [vmem:[#allocation5 + $0xd0] ss:$8 sps:$4 sm:$0xff]   ;;  %v3148_v22 = vld [vmem:[#allocation5 + $0x340] ss:$8 sps:$4 sm:$0xff]  }
  0x96   :  { %1281 = vmatprep.subr.bf16.mxu0 %v3017_v33  ;;  %v3176_v33 = vld [vmem:[#allocation5 + $0xe4] ss:$8 sps:$4 sm:$0xff]  }
  0x98   :  { %1163 = vmatpush1.bf16.msra.mxu1 %v3166_v27  ;;  %v3208_v27 = vld [vmem:[#allocation2 + $0x11c] ss:$28 sps:$4 sm:$0xff]  }
  0x99   :  { %1282 = vmatpush1.bf16.msra.mxu0 %v3019_v35  ;;  %1164 = vmatprep.subr.bf16.mxu1 %v3169_v29  ;;  %v3076_v35 = vld [vmem:[#allocation2 + $0x158] ss:$28 sps:$4 sm:$0xff]  }
  0x9a   :  { %1364 = vmatprep.subr.bf16.mxu0 %v3025_v37  ;;  %v3178_v37 = vld [vmem:[#allocation5 + $0xe0] ss:$8 sps:$4 sm:$0xff]   ;;  %v3143_v29 = vld [vmem:[#allocation2 + $0xf4] ss:$28 sps:$4 sm:$0xff]  }
  0x9c   :  { %1284 = vmatmul.mubr.bf16.vlgmr.msra.gmra.mrb[0].mxu0 %v3020_v41  ;;  %1165 = vmatpush1.bf16.msra.mxu1 %v3175_v32  ;;  %v3083_v41 = vld [vmem:[#allocation2 + $0x194] ss:$28 sps:$4 sm:$0xff]  }
  0x9d   :  { %1365 = vmatpush1.bf16.msra.mxu0 %v3023_v42  ;;  %1293 = vmatprep.mubr.bf16.mxu0 %v3029_v44  ;;  %v3187_v42 = vld [vmem:[#allocation5 + $0xf0] ss:$8 sps:$4 sm:$0xff]   ;;  %v3088_v44 = vld [vmem:[#allocation5 + $0x2e4] ss:$8 sps:$4 sm:$0xff]  }
  0x9e   :  { %1366 = vmatprep.subr.bf16.mxu0 %v3028_v43  ;;  %1166 = vmatprep.subr.bf16.mxu1 %v3176_v33  ;;  %v3080_v43 = vld [vmem:[#allocation5 + $0x2d0] ss:$8 sps:$4 sm:$0xff]  }
  0x9f   :  { %v3184_v32 = vld [vmem:[#allocation5 + $0x370] ss:$8 sps:$4 sm:$0xff]  }
  0xa0   :  { %1167 = vmatpush1.bf16.msra.mxu1 %v3178_v37  ;;  %v3210_v33 = vld [vmem:[#allocation2 + $0x118] ss:$28 sps:$4 sm:$0xff]   ;;  %v3214_v37 = vld [vmem:[#allocation2 + $0x150] ss:$28 sps:$4 sm:$0xff]  }
  0xa1   :  { %1367 = vmatpush1.bf16.msra.mxu0 %v3026_v47  ;;  %1168 = vmatprep.subr.bf16.mxu1 %v3181_v39  ;;  %v3085_v47 = vld [vmem:[#allocation2 + $0x190] ss:$28 sps:$4 sm:$0xff]   ;;  %v3159_v39 = vld [vmem:[#allocation2 + $0x128] ss:$28 sps:$4 sm:$0xff]  }
  0xa2   :  { %1368 = vmatprep.subr.bf16.mxu0 %v3034_v48  ;;  %v3086_v48 = vld [vmem:[#allocation5 + $0x2e0] ss:$8 sps:$4 sm:$0xff]  }
  0xa4   :  { %1294 = vmatmul.mubr.bf16.gmra.mrb[4].mxu0 %v3031_v51  ;;  %1169 = vmatpush1.bf16.msra.mxu1 %v3187_v42  ;;  %v3220_v51 = vld [vmem:[#allocation7 + $0x40] sm:$0xff]  }
  0xa5   :  { %1369 = vmatpush1.bf16.msra.mxu0 %v3032_v52  ;;  %1303 = vmatprep.mubr.bf16.mxu0 %v3038_v53  ;;  %v3221_v52 = vld [vmem:[#allocation7] sm:$0xff]   ;;  %v3222_v53 = vld [vmem:[#allocation7 + $0x48] sm:$0xff]  }
  0xa6   :  { %1370 = vmatprep.subr.bf16.mxu0 %v3037_v54  ;;  %v3091_v54 = vld [vmem:[#allocation5 + $0x2f0] ss:$8 sps:$4 sm:$0xff]   ;;  %2671 = vmatprep.subr.bf16.mxu1 %v3220_v51  ;;  %v3171_v42 = vld [vmem:[#allocation2 + $0x160] ss:$28 sps:$4 sm:$0xff]  }
  0xa7   :  { %1171 = vmatmul.mubr.bf16.vlgmr.msra.gmra.mrb[0].mxu1 %v3188_v45  ;;  %v3467_v45 = vmov 0   ;;  %v3207_v51 = vld [vmem:[#allocation2 + $0xf8] ss:$28 sps:$4 sm:$0xff]  }
  0xa8   :  { %1180 = vmatprep.mubr.bf16.mxu1 %v3192_v46  ;;  %2672 = vmatpush3.bf16.msra.mxu1 %v3221_v52  ;;  %v3191_v46 = vld [vmem:[#allocation2 + $0x18] ss:$28 sps:$4 sm:$0xff]   ;;  %v3211_v52 = vld [vmem:[#allocation2 + $0x130] ss:$28 sps:$4 sm:$0xff]  }
  0xa9   :  { %1371 = vmatpush1.bf16.msra.mxu0 %v3035_v57  ;;  %v3102_v57 = vld [vmem:[#allocation5 + $0x304] ss:$8 sps:$4 sm:$0xff]   ;;  %2673 = vmatprep.subr.bf16.mxu1 %v3222_v53 }
  0xaa   :  { %1372 = vmatprep.subr.bf16.mxu0 %v3043_v58  ;;  %v3196_v58 = vld [vmem:[#allocation2 + $0x74] ss:$28 sps:$4 sm:$0xff]   ;;  %v3215_v53 = vld [vmem:[#allocation2 + $0x168] ss:$28 sps:$4 sm:$0xff]  }
  0xac   :  { %1304 = vmatmul.mubr.bf16.gmra.mrb[8].mxu0 %v3040_v61  ;;  %v3223_v61 = vld [vmem:[#allocation7 + $0x8] sm:$0xff]  }
  0xad   :  { %1373 = vmatpush1.bf16.msra.mxu0 %v3041_v62  ;;  %1313 = vmatprep.mubr.bf16.mxu0 %v3047_v0  ;;  %v3224_v62 = vld [vmem:[#allocation7 + $0x50] sm:$0xff]  }
  0xae   :  { %1374 = vmatprep.subr.bf16.mxu0 %v3046_v63  ;;  %v3114_v63 = vld [vmem:[#allocation5 + $0x314] ss:$8 sps:$4 sm:$0xff]   ;;  %2674 = vmatpush3.bf16.msra.mxu1 %v3223_v61 }
  0xaf   :  { %1181 = vmatmul.mubr.bf16.gmra.mrb[4].mxu1 %v3194_v55  ;;  %v3225_v0 = vld [vmem:[#allocation7 + $0x10] sm:$0xff]   ;;  %2675 = vmatprep.subr.bf16.mxu1 %v3224_v62  ;;  %v3234_v55 = vld [vmem:[#allocation7 + $0x78] sm:$0xff]  }
  0xb0   :  { %1190 = vmatprep.mubr.bf16.mxu1 %v3196_v58 }
  0xb1   :  { %1375 = vmatpush1.bf16.msra.mxu0 %v3044_v3  ;;  %v3198_v3 = vld [vmem:[#allocation2 + $0x70] ss:$28 sps:$4 sm:$0xff]  }
  0xb2   :  { %1376 = vmatprep.subr.bf16.mxu0 %v3052_v4  ;;  %v3126_v4 = vld [vmem:[#allocation5 + $0x324] ss:$8 sps:$4 sm:$0xff]   ;;  %2676 = vmatpush3.bf16.msra.mxu1 %v3225_v0 }
  0xb3   :  { %2677 = vmatprep.subr.bf16.mxu1 %v3226_v1  ;;  %v3591_v1 = vld [vmem:[#allocation8] sm:$0xff]  }
  0xb4   :  { %1314 = vmatmul.mubr.bf16.gmra.mrb[12].mxu0 %v3049_v7  ;;  %v3111_v7 = vld [vmem:[#allocation2 + $0x48] ss:$28 sps:$4 sm:$0xff]  }
  0xb5   :  { %1377 = vmatpush1.bf16.msra.mxu0 %v3050_v8  ;;  %1323 = vmatprep.mubr.bf16.mxu0 %v3056_v9  ;;  %v3228_v8 = vld [vmem:[#allocation7 + $0x60] sm:$0xff]  }
  0xb6   :  { %1378 = vmatprep.subr.bf16.mxu0 %v3055_v10  ;;  %v3119_v9 = vld [vmem:[#allocation2 + $0x84] ss:$28 sps:$4 sm:$0xff]   ;;  %2678 = vmatpush3.bf16.msra.mxu1 %v3227_v6 }
  0xb7   :  { %v3124_v10 = vld [vmem:[#allocation5 + $0x320] ss:$8 sps:$4 sm:$0xff]   ;;  %1191 = vmatmul.mubr.bf16.gmra.mrb[8].mxu1 %v3198_v3  ;;  %2679 = vmatprep.subr.bf16.mxu1 %v3228_v8 }
  0xb8   :  { %1200 = vmatprep.mubr.bf16.mxu1 %v3200_v5 }
  0xb9   :  { %1379 = vmatpush1.bf16.msra.mxu0 %v3053_v13  ;;  %v3230_v13 = vld [vmem:[#allocation7 + $0x68] sm:$0xff]  }
  0xba   :  { %1380 = vmatprep.subr.bf16.mxu0 %v3061_v14  ;;  %v3136_v14 = vld [vmem:[#allocation5 + $0x330] ss:$8 sps:$4 sm:$0xff]   ;;  %2680 = vmatpush3.bf16.msra.mxu1 %v3229_v12 }
  0xbb   :  { %2681 = vmatprep.subr.bf16.mxu1 %v3230_v13 }
  0xbc   :  { %1324 = vmatmul.mubr.bf16.gmra.mrb[16].mxu0 %v3058_v15  ;;  %v3202_v15 = vld [vmem:[#allocation2 + $0xa8] ss:$28 sps:$4 sm:$0xff]  }
  0xbd   :  { %1381 = vmatpush1.bf16.msra.mxu0 %v3059_v18  ;;  %1333 = vmatprep.mubr.bf16.mxu0 %v3065_v20  ;;  %v3231_v18 = vld [vmem:[#allocation7 + $0x28] sm:$0xff]   ;;  %v3232_v20 = vld [vmem:[#allocation7 + $0x70] sm:$0xff]  }
  0xbe   :  { %1382 = vmatprep.subr.bf16.mxu0 %v3064_v19  ;;  %v3123_v19 = vld [vmem:[#allocation2 + $0x80] ss:$28 sps:$4 sm:$0xff]   ;;  %2682 = vmatpush3.bf16.msra.mxu1 %v3231_v18 }
  0xbf   :  { %1201 = vmatmul.mubr.bf16.gmra.mrb[12].mxu1 %v3202_v15  ;;  %2683 = vmatprep.subr.bf16.mxu1 %v3232_v20 }
  0xc0   :  { %1210 = vmatprep.mubr.bf16.mxu1 %v3204_v17 }
  0xc1   :  { %1383 = vmatpush1.bf16.msra.mxu0 %v3062_v24  ;;  %v3160_v24 = vld [vmem:[#allocation5 + $0x350] ss:$8 sps:$4 sm:$0xff]  }
  0xc2   :  { %1384 = vmatprep.subr.bf16.mxu0 %v3070_v25  ;;  %v3206_v25 = vld [vmem:[#allocation2 + $0xe0] ss:$28 sps:$4 sm:$0xff]  }
  0xc4   :  { %1334 = vmatmul.mubr.bf16.gmra.mrb[20].mxu0 %v3067_v26  ;;  %v3174_v26 = vld [vmem:[#allocation5 + $0x364] ss:$8 sps:$4 sm:$0xff]  }
  0xc5   :  { %1385 = vmatpush1.bf16.msra.mxu0 %v3068_v28  ;;  %1343 = vmatprep.mubr.bf16.mxu0 %v3074_v31  ;;  %v3135_v28 = vld [vmem:[#allocation2 + $0xb8] ss:$28 sps:$4 sm:$0xff]  }
  0xc6   :  { %1386 = vmatprep.subr.bf16.mxu0 %v3073_v30  ;;  %v3172_v30 = vld [vmem:[#allocation5 + $0x360] ss:$8 sps:$4 sm:$0xff]   ;;  %v3186_v31 = vld [vmem:[#allocation5 + $0x374] ss:$8 sps:$4 sm:$0xff]  }
  0xc7   :  { %1211 = vmatmul.mubr.bf16.gmra.mrb[16].mxu1 %v3206_v25 }
  0xc8   :  { %1220 = vmatprep.mubr.bf16.mxu1 %v3208_v27 }
  0xc9   :  { %1387 = vmatpush1.bf16.msra.mxu0 %v3071_v34  ;;  %v3212_v34 = vld [vmem:[#allocation2 + $0x154] ss:$28 sps:$4 sm:$0xff]  }
  0xca   :  { %1388 = vmatprep.subr.bf16.mxu0 %v3079_v36  ;;  %v3155_v36 = vld [vmem:[#allocation2 + $0x12c] ss:$28 sps:$4 sm:$0xff]  }
  0xcc   :  { %1344 = vmatmul.mubr.bf16.gmra.mrb[24].mxu0 %v3076_v35  ;;  %v3147_v35 = vld [vmem:[#allocation2 + $0xf0] ss:$28 sps:$4 sm:$0xff]  }
  0xcd   :  { %1389 = vmatpush1.bf16.msra.mxu0 %v3077_v38  ;;  %1353 = vmatprep.mubr.bf16.mxu0 %v3083_v41  ;;  %v3216_v38 = vld [vmem:[#allocation2 + $0x18c] ss:$28 sps:$4 sm:$0xff]  }
  0xce   :  { %1390 = vmatprep.subr.bf16.mxu0 %v3082_v40  ;;  %v3167_v40 = vld [vmem:[#allocation2 + $0x164] ss:$28 sps:$4 sm:$0xff]  }
  0xcf   :  { %1221 = vmatmul.mubr.bf16.gmra.mrb[20].mxu1 %v3210_v33  ;;  %v3218_v41 = vld [vmem:[#allocation2 + $0x188] ss:$28 sps:$4 sm:$0xff]  }
  0xd0   :  { %1230 = vmatprep.mubr.bf16.mxu1 %v3212_v34 }
  0xd1   :  { %1391 = vmatpush1.bf16.msra.mxu0 %v3080_v43  ;;  %v3179_v43 = vld [vmem:[#allocation2 + $0x19c] ss:$28 sps:$4 sm:$0xff]  }
  0xd2   :  { %1392 = vmatprep.subr.bf16.mxu0 %v3088_v44  ;;  %v3183_v44 = vld [vmem:[#allocation2 + $0x198] ss:$28 sps:$4 sm:$0xff]  }
  0xd4   :  { %1354 = vmatmul.mubr.bf16.gmra.mrb[28].mxu0 %v3085_v47  ;;  %v3195_v47 = vld [vmem:[#allocation2 + $0x50] ss:$28 sps:$4 sm:$0xff]  }
  0xd5   :  { %1393 = vmatpush1.bf16.msra.mxu0 %v3086_v48  ;;  %1396 = vmatprep.mubr.bf16.mxu0 %v3097_v49  ;;  %v3233_v48 = vld [vmem:[#allocation7 + $0x30] sm:$0xff]   ;;  %v3199_v49 = vld [vmem:[#allocation2 + $0x88] ss:$28 sps:$4 sm:$0xff]  }
  0xd6   :  { %1394 = vmatprep.subr.bf16.mxu0 %v3093_v50  ;;  %2684 = vmatpush3.bf16.msra.mxu1 %v3233_v48  ;;  %v3203_v50 = vld [vmem:[#allocation2 + $0xc0] ss:$28 sps:$4 sm:$0xff]  }
  0xd7   :  { %1231 = vmatmul.mubr.bf16.gmra.mrb[24].mxu1 %v3214_v37  ;;  %2685 = vmatprep.subr.bf16.mxu1 %v3234_v55 }
  0xd8   :  { %1240 = vmatprep.mubr.bf16.mxu1 %v3216_v38 }
  0xd9   :  { %1395 = vmatpush1.bf16.msra.mxu0 %v3091_v54  ;;  %v3219_v54 = vld [vmem:[#allocation2 + $0x1a0] ss:$28 sps:$4 sm:$0xff]  }
  0xda   :  { %1477 = vmatprep.subr.bf16.mxu0 %v3102_v57 }
  0xdc   :  { %1397 = vmatmul.mubr.bf16.vlgmr.msra.gmra.mrb[0].mxu0 %v3095_v56  ;;  %v3235_v56 = vld [vmem:[#allocation7 + $0x38] sm:$0xff]  }
  0xdd   :  { %1478 = vmatpush1.bf16.msra.mxu0 %v3100_v59  ;;  %1406 = vmatprep.mubr.bf16.mxu0 %v3107_v60 }
  0xde   :  { %1479 = vmatprep.subr.bf16.mxu0 %v3114_v63  ;;  %2686 = vmatpush3.bf16.msra.mxu1 %v3235_v56 }
  0xdf   :  { %1241 = vmatmul.mubr.bf16.gmra.mrb[28].mxu1 %v3218_v41  ;;  %2767 = vmatprep.subr.bf16.mxu1 %v3591_v1 }
  0xe1   :  { %1480 = vmatpush1.bf16.msra.mxu0 %v3112_v2 }
  0xe2   :  { %1481 = vmatprep.subr.bf16.mxu0 %v3126_v4 }
  0xe4   :  { %1407 = vmatmul.mubr.bf16.gmra.mrb[4].mxu0 %v3111_v7 }
  0xe5   :  { %1416 = vmatprep.mubr.bf16.mxu0 %v3119_v9  ;;  %1482 = vmatpush1.bf16.msra.mxu0 %v3124_v10 }
  0xe6   :  { %1483 = vmatprep.subr.bf16.mxu0 %v3138_v11 }
  0xe9   :  { %1484 = vmatpush1.bf16.msra.mxu0 %v3136_v14 }
  0xea   :  { %1485 = vmatprep.subr.bf16.mxu0 %v3150_v16 }
  0xec   :  { %1417 = vmatmul.mubr.bf16.gmra.mrb[8].mxu0 %v3123_v19 }
  0xed   :  { %1426 = vmatprep.mubr.bf16.mxu0 %v3131_v21  ;;  %1486 = vmatpush1.bf16.msra.mxu0 %v3148_v22  ;;  %v280_v22 = vlaneseq }
  0xee   :  { %1487 = vmatprep.subr.bf16.mxu0 %v3162_v23 }
  0xef   :  { %v281_v27 = vshrl.u32 %v280_v22, 7 }
  0xf1   :  { %1488 = vmatpush1.bf16.msra.mxu0 %v3160_v24 }
  0xf2   :  { %1489 = vmatprep.subr.bf16.mxu0 %v3174_v26 }
  0xf4   :  { %1427 = vmatmul.mubr.bf16.gmra.mrb[12].mxu0 %v3135_v28  ;;  %v282_v28 = vsub.s32 0, %v281_v27 }
  0xf5   :  { %1436 = vmatprep.mubr.bf16.mxu0 %v3143_v29  ;;  %1490 = vmatpush1.bf16.msra.mxu0 %v3172_v30  ;;  %v278_v29 = vld [vmem:[%s3891_s2] sm:$0x3]  ;;  %v286_v30 = vsub.s32 1, %v281_v27 }
  0xf6   :  { %1491 = vmatprep.subr.bf16.mxu0 %v3186_v31  ;;  %v3646_v31 = vrot.slane %v278_v29, %v282_v28 }
  0xf9   :  { %1492 = vmatpush1.bf16.msra.mxu0 %v3184_v32  ;;  %v3648_v32 = vrot.slane %v278_v29, %v286_v30 }
  0xfc   :  { %1437 = vmatmul.mubr.bf16.gmra.mrb[16].mxu0 %v3147_v35 }
  0xfd   :  { %1446 = vmatprep.mubr.bf16.mxu0 %v3155_v36 }
 0x104   :  { %1447 = vmatmul.mubr.bf16.gmra.mrb[20].mxu0 %v3159_v39 }
 0x105   :  { %1456 = vmatprep.mubr.bf16.mxu0 %v3167_v40 }
 0x10c   :  { %1457 = vmatmul.mubr.bf16.gmra.mrb[24].mxu0 %v3171_v42 }
 0x10d   :  { %1466 = vmatprep.mubr.bf16.mxu0 %v3179_v43 }
 0x114   :  { %1467 = vmatmul.mubr.bf16.gmra.mrb[28].mxu0 %v3183_v44 }
 0x115   :  { %1509 = vmatprep.mubr.bf16.mxu0 %v3467_v45 }
 0x11c   :  { %1510 = vmatmul.mubr.bf16.vlgmr.msra.gmra.mrb[0].mxu0 %v3191_v46 }
 0x11d   :  { %1519 = vmatprep.mubr.bf16.mxu0 %v3467_v45 }
 0x124   :  { %1520 = vmatmul.mubr.bf16.gmra.mrb[4].mxu0 %v3195_v47 }
 0x125   :  { %1529 = vmatprep.mubr.bf16.mxu0 %v3467_v45 }
 0x12c   :  { %1530 = vmatmul.mubr.bf16.gmra.mrb[8].mxu0 %v3199_v49 }
 0x12d   :  { %1539 = vmatprep.mubr.bf16.mxu0 %v3467_v45 }
 0x134   :  { %1540 = vmatmul.mubr.bf16.gmra.mrb[12].mxu0 %v3203_v50 }
 0x135   :  { %1549 = vmatprep.mubr.bf16.mxu0 %v3467_v45 }
 0x13c   :  { %1550 = vmatmul.mubr.bf16.gmra.mrb[16].mxu0 %v3207_v51 }
 0x13d   :  { %1559 = vmatprep.mubr.bf16.mxu0 %v3467_v45 }
 0x144   :  { %1560 = vmatmul.mubr.bf16.gmra.mrb[20].mxu0 %v3211_v52 }
 0x145   :  { %1569 = vmatprep.mubr.bf16.mxu0 %v3467_v45 }
 0x14c   :  { %1570 = vmatmul.mubr.bf16.gmra.mrb[24].mxu0 %v3215_v53 }
 0x14d   :  { %1579 = vmatprep.mubr.bf16.mxu0 %v3467_v45 }
 0x154   :  { %1580 = vmatmul.mubr.bf16.gmra.mrb[28].mxu0 %v3219_v54 }
 0x17a   :  { %v1172_v57 = vpop.f32.mrb[0].mxu1 }
 0x17b   :  { %v1174_v58 = vpop.f32.mrb[1].mxu1  ;;  %v1173_v33 = vadd.f32 %v1172_v57, %v3646_v31  ;;  %v3237_v57 = vld [vmem:[#allocation8 + $0x8] sm:$0xff]  }
 0x17c   :  { %v1176_v59 = vpop.f32.mrb[2].mxu1  ;;  %v1175_v34 = vadd.f32 %v1174_v58, %v3648_v32 }
 0x17d   :  { %v1178_v60 = vpop.f32.mrb[3].mxu1  ;;  %v1177_v36 = vadd.f32 %v1176_v59, %v3646_v31 }
 0x17e   :  { %v1179_v39 = vadd.f32 %v1178_v60, %v3648_v32 }
 0x182   :  { %v1182_v61 = vpop.f32.mrb[4].mxu1 }
 0x183   :  { %v1184_v62 = vpop.f32.mrb[5].mxu1  ;;  %v1183_v47 = vadd.f32 %v1182_v61, %v3646_v31 }
 0x184   :  { %v1186_v63 = vpop.f32.mrb[6].mxu1  ;;  %v1185_v50 = vadd.f32 %v1184_v62, %v3648_v32 }
 0x185   :  { %v1188_v0 = vpop.f32.mrb[7].mxu1  ;;  %v1187_v54 = vadd.f32 %v1186_v63, %v3646_v31  ;;  %v3238_v63 = vld [vmem:[#allocation8 + $0x10] sm:$0xff]  }
 0x186   :  { %v1189_v58 = vadd.f32 %v1188_v0, %v3648_v32 }
 0x18a   :  { %v3593_v2 = vpop.f32.mrb[8].mxu1 }
 0x18b   :  { %v3596_v3 = vpop.f32.mrb[9].mxu1  ;;  %v1193_v30 = vadd.f32 %v3593_v2, %v3646_v31 }
 0x18c   :  { %v3598_v4 = vpop.f32.mrb[10].mxu1  ;;  %v1195_v0 = vadd.f32 %v3596_v3, %v3648_v32 }
 0x18d   :  { %v3600_v5 = vpop.f32.mrb[11].mxu1 }
 0x18e   :  { %v1199_v2 = vadd.f32 %v3600_v5, %v3648_v32 }
 0x192   :  { %v3602_v6 = vpop.f32.mrb[12].mxu1 }
 0x193   :  { %v3604_v7 = vpop.f32.mrb[13].mxu1 }
 0x194   :  { %v3606_v8 = vpop.f32.mrb[14].mxu1 }
 0x195   :  { %v3608_v9 = vpop.f32.mrb[15].mxu1 }
 0x19a   :  { %v3610_v10 = vpop.f32.mrb[16].mxu1 }
 0x19b   :  { %v3612_v11 = vpop.f32.mrb[17].mxu1 }
 0x19c   :  { %v3614_v12 = vpop.f32.mrb[18].mxu1 }
 0x19d   :  { %v3616_v13 = vpop.f32.mrb[19].mxu1 }
 0x1a2   :  { %v3618_v14 = vpop.f32.mrb[20].mxu1 }
 0x1a3   :  { %v3620_v15 = vpop.f32.mrb[21].mxu1 }
 0x1a4   :  { %v3622_v16 = vpop.f32.mrb[22].mxu1 }
 0x1a5   :  { %v3624_v17 = vpop.f32.mrb[23].mxu1 }
 0x1aa   :  { %v3626_v18 = vpop.f32.mrb[24].mxu1 }
 0x1ab   :  { %v3628_v19 = vpop.f32.mrb[25].mxu1 }
 0x1ac   :  { %v3630_v20 = vpop.f32.mrb[26].mxu1 }
 0x1ad   :  { %v3632_v21 = vpop.f32.mrb[27].mxu1 }
 0x1b2   :  { %v3634_v23 = vpop.f32.mrb[28].mxu1 }
 0x1b3   :  { %v3636_v24 = vpop.f32.mrb[29].mxu1 }
 0x1b4   :  { %v3638_v25 = vpop.f32.mrb[30].mxu1 }
 0x1b5   :  { %v3640_v26 = vpop.f32.mrb[31].mxu1 }
 0x1ef   :  { %v1511_v35 = vpop.f32.mrb[0].mxu0 }
 0x1f0   :  { %v2832_v37 = vadd.f32 %v1511_v35, %v1173_v33  ;;  %v1513_v38 = vpop.f32.mrb[1].mxu0 }
 0x1f1   :  { %v2834_v40 = vadd.f32 %v1513_v38, %v1175_v34  ;;  %v1515_v41 = vpop.f32.mrb[2].mxu0  ;;  %v1197_v38 = vadd.f32 %v3598_v4, %v3646_v31 }
 0x1f2   :  { %v2836_v42 = vadd.f32 %v1515_v41, %v1177_v36  ;;  %v1517_v43 = vpop.f32.mrb[3].mxu0  ;;  %v1590_v45 = vmax.f32 %v2832_v37, 0.0 }
 0x1f3   :  { %v2838_v44 = vadd.f32 %v1517_v43, %v1179_v39  ;;  %v1591_v48 = vmax.f32 %v2834_v40, 0.0 }
 0x1f4   :  { %v1592_v46 = vmax.f32 %v2836_v42, 0.0 }
 0x1f5   :  { %v1593_v49 = vmax.f32 %v2838_v44, 0.0 }
 0x1f6   :  { %v1622_v51 = vpack.c.bf16 %v1592_v46, %v1590_v45  ;;  %v1203_v46 = vadd.f32 %v3602_v6, %v3646_v31 }
 0x1f7   :  { %v1623_v52 = vpack.c.bf16 %v1593_v49, %v1591_v48  ;;  %v1521_v53 = vpop.f32.mrb[4].mxu0  ;;  %v1205_v48 = vadd.f32 %v3604_v7, %v3648_v32 }
 0x1f8   :  { %v2840_v55 = vadd.f32 %v1521_v53, %v1183_v47  ;;  %v1523_v56 = vpop.f32.mrb[5].mxu0 }
 0x1f9   :  { %v2842_v59 = vadd.f32 %v1523_v56, %v1185_v50  ;;  %v1525_v60 = vpop.f32.mrb[6].mxu0  ;;  %1805 = vmatprep.mubr.bf16.mxu1 %v1623_v52 }
 0x1fa   :  { %v2844_v27 = vadd.f32 %v1525_v60, %v1187_v54  ;;  %v1527_v28 = vpop.f32.mrb[7].mxu0  ;;  %1806 = vmatmul.mubr.bf16.vlgmr.msra.gmra.mrb[32].mxu1 %v1622_v51  ;;  %v1594_v62 = vmax.f32 %v2840_v55, 0.0  ;;  %v1207_v51 = vadd.f32 %v3606_v8, %v3646_v31  ;;  %v1209_v54 = vadd.f32 %v3608_v9, %v3648_v32 }
 0x1fb   :  { %v2846_v61 = vadd.f32 %v1527_v28, %v1189_v58  ;;  %2768 = vmatpush3.bf16.msra.mxu1 %v3591_v1  ;;  %v1595_v33 = vmax.f32 %v2842_v59, 0.0  ;;  %v1213_v60 = vadd.f32 %v3610_v10, %v3646_v31  ;;  %v1215_v8 = vadd.f32 %v3612_v11, %v3648_v32 }
 0x1fc   :  { %v1596_v29 = vmax.f32 %v2844_v27, 0.0  ;;  %2769 = vmatprep.subr.bf16.mxu1 %v3237_v57 }
 0x1fd   :  { %v1597_v34 = vmax.f32 %v2846_v61, 0.0 }
 0x1fe   :  { %v1624_v35 = vpack.c.bf16 %v1596_v29, %v1594_v62  ;;  %v1217_v29 = vadd.f32 %v3614_v12, %v3646_v31  ;;  %v1225_v12 = vadd.f32 %v3620_v15, %v3648_v32 }
 0x1ff   :  { %v1625_v36 = vpack.c.bf16 %v1597_v34, %v1595_v33  ;;  %v1531_v37 = vpop.f32.mrb[8].mxu0  ;;  %2770 = vmatpush3.bf16.msra.mxu1 %v3237_v57  ;;  %v1219_v33 = vadd.f32 %v3616_v13, %v3648_v32 }
 0x200   :  { %v2848_v1 = vadd.f32 %v1531_v37, %v1193_v30  ;;  %v1533_v39 = vpop.f32.mrb[9].mxu0  ;;  %2771 = vmatprep.subr.bf16.mxu1 %v3238_v63 }
 0x201   :  { %v2850_v40 = vadd.f32 %v1533_v39, %v1195_v0  ;;  %v1535_v41 = vpop.f32.mrb[10].mxu0  ;;  %1813 = vmatprep.mubr.bf16.mxu1 %v1625_v36 }
 0x202   :  { %v2852_v42 = vadd.f32 %v1535_v41, %v1197_v38  ;;  %v1537_v43 = vpop.f32.mrb[11].mxu0  ;;  %1814 = vmatmul.mubr.bf16.gmra.mrb[36].mxu1 %v1624_v35  ;;  %v1598_v44 = vmax.f32 %v2848_v1, 0.0  ;;  %v1223_v38 = vadd.f32 %v3618_v14, %v3646_v31  ;;  %v1227_v41 = vadd.f32 %v3622_v16, %v3646_v31 }
 0x203   :  { %v2854_v3 = vadd.f32 %v1537_v43, %v1199_v2  ;;  %2772 = vmatpush3.bf16.msra.mxu1 %v3238_v63  ;;  %v1599_v4 = vmax.f32 %v2850_v40, 0.0  ;;  %v1235_v16 = vadd.f32 %v3628_v19, %v3648_v32 }
 0x204   :  { %v1600_v45 = vmax.f32 %v2852_v42, 0.0 }
 0x205   :  { %v1601_v47 = vmax.f32 %v2854_v3, 0.0  ;;  %v1229_v3 = vadd.f32 %v3624_v17, %v3648_v32 }
 0x206   :  { %v1626_v49 = vpack.c.bf16 %v1600_v45, %v1598_v44 }
 0x207   :  { %v1627_v5 = vpack.c.bf16 %v1601_v47, %v1599_v4  ;;  %v1541_v50 = vpop.f32.mrb[12].mxu0 }
 0x208   :  { %v2856_v52 = vadd.f32 %v1541_v50, %v1203_v46  ;;  %v1543_v53 = vpop.f32.mrb[13].mxu0 }
 0x209   :  { %v2858_v55 = vadd.f32 %v1543_v53, %v1205_v48  ;;  %v1545_v56 = vpop.f32.mrb[14].mxu0  ;;  %1821 = vmatprep.mubr.bf16.mxu1 %v1627_v5  ;;  %v1233_v48 = vadd.f32 %v3626_v18, %v3646_v31 }
 0x20a   :  { %v2860_v6 = vadd.f32 %v1545_v56, %v1207_v51  ;;  %v1547_v57 = vpop.f32.mrb[15].mxu0  ;;  %1822 = vmatmul.mubr.bf16.gmra.mrb[40].mxu1 %v1626_v49  ;;  %v1602_v59 = vmax.f32 %v2856_v52, 0.0  ;;  %v1237_v52 = vadd.f32 %v3630_v20, %v3646_v31  ;;  %v1245_v20 = vadd.f32 %v3636_v24, %v3648_v32 }
 0x20b   :  { %v2862_v58 = vadd.f32 %v1547_v57, %v1209_v54  ;;  %v1603_v27 = vmax.f32 %v2858_v55, 0.0  ;;  %v1239_v55 = vadd.f32 %v3632_v21, %v3648_v32 }
 0x20c   :  { %v1604_v7 = vmax.f32 %v2860_v6, 0.0 }
 0x20d   :  { %v1605_v28 = vmax.f32 %v2862_v58, 0.0 }
 0x20e   :  { %v1628_v61 = vpack.c.bf16 %v1604_v7, %v1602_v59  ;;  %v1243_v7 = vadd.f32 %v3634_v23, %v3646_v31 }
 0x20f   :  { %v1629_v62 = vpack.c.bf16 %v1605_v28, %v1603_v27  ;;  %v1551_v9 = vpop.f32.mrb[16].mxu0 }
 0x210   :  { %v2864_v30 = vadd.f32 %v1551_v9, %v1213_v60  ;;  %v1553_v63 = vpop.f32.mrb[17].mxu0 }
 0x211   :  { %v2866_v34 = vadd.f32 %v1553_v63, %v1215_v8  ;;  %v1555_v0 = vpop.f32.mrb[18].mxu0  ;;  %1829 = vmatprep.mubr.bf16.mxu1 %v1629_v62 }
 0x212   :  { %v2868_v10 = vadd.f32 %v1555_v0, %v1217_v29  ;;  %v1557_v35 = vpop.f32.mrb[19].mxu0  ;;  %1830 = vmatmul.mubr.bf16.gmra.mrb[44].mxu1 %v1628_v61  ;;  %v1606_v37 = vmax.f32 %v2864_v30, 0.0  ;;  %v1247_v61 = vadd.f32 %v3638_v25, %v3646_v31  ;;  %v1249_v29 = vadd.f32 %v3640_v26, %v3648_v32  ;;  %v3239_v25 = vld [vmem:[#allocation8 + $0x18] sm:$0xff]   ;;  %v3240_v31 = vld [vmem:[#allocation8 + $0x20] sm:$0xff]   ;;  %v3241_v26 = vld [vmem:[#allocation8 + $0x28] sm:$0xff]  }
 0x213   :  { %v2870_v36 = vadd.f32 %v1557_v35, %v1219_v33  ;;  %v1607_v1 = vmax.f32 %v2866_v34, 0.0  ;;  %2773 = vmatprep.subr.bf16.mxu1 %v3239_v25  ;;  %v3242_v32 = vld [vmem:[#allocation8 + $0x30] sm:$0xff]  }
 0x214   :  { %v1608_v11 = vmax.f32 %v2868_v10, 0.0  ;;  %2774 = vmatpush3.bf16.msra.mxu1 %v3239_v25 }
 0x215   :  { %v1609_v39 = vmax.f32 %v2870_v36, 0.0  ;;  %2775 = vmatprep.subr.bf16.mxu1 %v3240_v31 }
 0x216   :  { %v1630_v2 = vpack.c.bf16 %v1608_v11, %v1606_v37  ;;  %v3243_v11 = vld [vmem:[#allocation8 + $0x38] sm:$0xff]  }
 0x217   :  { %v1631_v40 = vpack.c.bf16 %v1609_v39, %v1607_v1  ;;  %v1561_v13 = vpop.f32.mrb[20].mxu0  ;;  %v3710_v39 = vld [vmem:[%s3893_s4] ss:$0 sm:$0xff] }
 0x218   :  { %v2872_v42 = vadd.f32 %v1561_v13, %v1223_v38  ;;  %v1563_v43 = vpop.f32.mrb[21].mxu0  ;;  %2776 = vmatpush3.bf16.msra.mxu1 %v3240_v31  ;;  %v3244_v38 = vld [vmem:[#allocation10] sm:$0xff]  }
 0x219   :  { %v2874_v44 = vadd.f32 %v1563_v43, %v1225_v12  ;;  %v1565_v45 = vpop.f32.mrb[22].mxu0  ;;  %1837 = vmatprep.mubr.bf16.mxu1 %v1631_v40  ;;  %2777 = vmatprep.subr.bf16.mxu1 %v3241_v26 }
 0x21a   :  { %v2876_v14 = vadd.f32 %v1565_v45, %v1227_v41  ;;  %v1567_v46 = vpop.f32.mrb[23].mxu0  ;;  %1838 = vmatmul.mubr.bf16.gmra.mrb[48].mxu1 %v1630_v2  ;;  %v1610_v47 = vmax.f32 %v2872_v42, 0.0 }
 0x21b   :  { %v2878_v4 = vadd.f32 %v1567_v46, %v1229_v3  ;;  %v1611_v49 = vmax.f32 %v2874_v44, 0.0 }
 0x21c   :  { %v1612_v15 = vmax.f32 %v2876_v14, 0.0  ;;  %2778 = vmatpush3.bf16.msra.mxu1 %v3241_v26 }
 0x21d   :  { %v1613_v5 = vmax.f32 %v2878_v4, 0.0  ;;  %2779 = vmatprep.subr.bf16.mxu1 %v3242_v32 }
 0x21e   :  { %v1632_v50 = vpack.c.bf16 %v1612_v15, %v1610_v47 }
 0x21f   :  { %v1633_v51 = vpack.c.bf16 %v1613_v5, %v1611_v49  ;;  %v1571_v17 = vpop.f32.mrb[24].mxu0 }
 0x220   :  { %v2880_v53 = vadd.f32 %v1571_v17, %v1233_v48  ;;  %v1573_v54 = vpop.f32.mrb[25].mxu0  ;;  %2780 = vmatpush3.bf16.msra.mxu1 %v3242_v32 }
 0x221   :  { %v2882_v56 = vadd.f32 %v1573_v54, %v1235_v16  ;;  %v1575_v6 = vpop.f32.mrb[26].mxu0  ;;  %1845 = vmatprep.mubr.bf16.mxu1 %v1633_v51  ;;  %2781 = vmatprep.subr.bf16.mxu1 %v3243_v11 }
 0x222   :  { %v2884_v18 = vadd.f32 %v1575_v6, %v1237_v52  ;;  %v1577_v57 = vpop.f32.mrb[27].mxu0  ;;  %1846 = vmatmul.mubr.bf16.gmra.mrb[52].mxu1 %v1632_v50  ;;  %v1614_v59 = vmax.f32 %v2880_v53, 0.0 }
 0x223   :  { %v2886_v58 = vadd.f32 %v1577_v57, %v1239_v55  ;;  %v1615_v60 = vmax.f32 %v2882_v56, 0.0  ;;  %v3245_v55 = vld [vmem:[#allocation10 + $0x8] sm:$0xff]  }
 0x224   :  { %v1616_v19 = vmax.f32 %v2884_v18, 0.0  ;;  %2782 = vmatpush3.bf16.msra.mxu1 %v3243_v11 }
 0x225   :  { %v1617_v27 = vmax.f32 %v2886_v58, 0.0  ;;  %2799 = vmatprep.subr.bf16.mxu1 %v3244_v38  ;;  %v3246_v58 = vld [vmem:[#allocation10 + $0x10] sm:$0xff]  }
 0x226   :  { %v1634_v28 = vpack.c.bf16 %v1616_v19, %v1614_v59 }
 0x227   :  { %v1635_v8 = vpack.c.bf16 %v1617_v27, %v1615_v60  ;;  %v1581_v21 = vpop.f32.mrb[28].mxu0 }
 0x228   :  { %v2888_v62 = vadd.f32 %v1581_v21, %v1243_v7  ;;  %v1583_v9 = vpop.f32.mrb[29].mxu0 }
 0x229   :  { %v2890_v30 = vadd.f32 %v1583_v9, %v1245_v20  ;;  %v1585_v63 = vpop.f32.mrb[30].mxu0  ;;  %1853 = vmatprep.mubr.bf16.mxu1 %v1635_v8  ;;  %v3247_v8 = vld [vmem:[#allocation10 + $0x18] sm:$0xff]  }
 0x22a   :  { %v2892_v23 = vadd.f32 %v1585_v63, %v1247_v61  ;;  %v1587_v33 = vpop.f32.mrb[31].mxu0  ;;  %1854 = vmatmul.mubr.bf16.gmra.mrb[56].mxu1 %v1634_v28  ;;  %v1618_v0 = vmax.f32 %v2888_v62, 0.0 }
 0x22b   :  { %v2894_v34 = vadd.f32 %v1587_v33, %v1249_v29  ;;  %v1619_v10 = vmax.f32 %v2890_v30, 0.0  ;;  %v3248_v29 = vld [vmem:[#allocation10 + $0x20] sm:$0xff]  }
 0x22c   :  { %v1620_v24 = vmax.f32 %v2892_v23, 0.0 }
 0x22d   :  { %v1621_v35 = vmax.f32 %v2894_v34, 0.0 }
 0x22e   :  { %v1636_v36 = vpack.c.bf16 %v1620_v24, %v1618_v0 }
 0x22f   :  { %v1637_v37 = vpack.c.bf16 %v1621_v35, %v1619_v10  ;;  %v3249_v10 = vld [vmem:[#allocation10 + $0x28] sm:$0xff]  }
 0x231   :  { %1861 = vmatprep.mubr.bf16.mxu1 %v1637_v37 }
 0x232   :  { %1862 = vmatmul.mubr.bf16.gmra.mrb[60].mxu1 %v1636_v36 }
 0x2cd   :  { %v2687_v1 = vpop.f32.mrb[32].mxu1 }
 0x2ce   :  { %v2688_v12 = vpop.f32.mrb[33].mxu1 }
 0x2cf   :  { %v2689_v2 = vadd.f32 %v2688_v12, %v2687_v1  ;;  %v2690_v40 = vpop.f32.mrb[34].mxu1 }
 0x2d0   :  { %v2691_v13 = vpop.f32.mrb[35].mxu1 }
 0x2d1   :  { %v1808_v41 = vadd.f32 %v2689_v2, %v3710_v39  ;;  %v2692_v42 = vadd.f32 %v2691_v13, %v2690_v40 }
 0x2d3   :  { %v1811_v43 = vadd.f32 %v2692_v42, %v3710_v39  ;;  %v1870_v3 = vmax.f32 %v1808_v41, 0.0 }
 0x2d5   :  { %v1871_v44 = vmax.f32 %v1811_v43, 0.0  ;;  %v2693_v45 = vpop.f32.mrb[36].mxu1 }
 0x2d6   :  { %v2694_v14 = vpop.f32.mrb[37].mxu1 }
 0x2d7   :  { %v2695_v46 = vadd.f32 %v2694_v14, %v2693_v45  ;;  %v2696_v4 = vpop.f32.mrb[38].mxu1  ;;  %v1886_v47 = vpack.c.bf16 %v1871_v44, %v1870_v3 }
 0x2d8   :  { %v2697_v15 = vpop.f32.mrb[39].mxu1 }
 0x2d9   :  { %v1816_v48 = vadd.f32 %v2695_v46, %v3710_v39  ;;  %v2698_v49 = vadd.f32 %v2697_v15, %v2696_v4  ;;  %2783 = vmatprep.mubr.bf16.mxu1 %v1886_v47 }
 0x2db   :  { %v1819_v5 = vadd.f32 %v2698_v49, %v3710_v39  ;;  %v1872_v16 = vmax.f32 %v1816_v48, 0.0 }
 0x2dd   :  { %v1873_v50 = vmax.f32 %v1819_v5, 0.0  ;;  %v2699_v51 = vpop.f32.mrb[40].mxu1 }
 0x2de   :  { %v2700_v17 = vpop.f32.mrb[41].mxu1 }
 0x2df   :  { %v1887_v52 = vpack.c.bf16 %v1873_v50, %v1872_v16  ;;  %v2701_v53 = vadd.f32 %v2700_v17, %v2699_v51  ;;  %v2702_v54 = vpop.f32.mrb[42].mxu1 }
 0x2e0   :  { %v2703_v56 = vpop.f32.mrb[43].mxu1 }
 0x2e1   :  { %v1824_v6 = vadd.f32 %v2701_v53, %v3710_v39  ;;  %v2704_v18 = vadd.f32 %v2703_v56, %v2702_v54  ;;  %2784 = vmatmul.mubr.bf16.vlgmr.msra.gmra.mrb[64].mxu1 %v1887_v52 }
 0x2e2   :  { %2800 = vmatpush3.bf16.msra.mxu1 %v3244_v38 }
 0x2e3   :  { %v1827_v57 = vadd.f32 %v2704_v18, %v3710_v39  ;;  %2801 = vmatprep.subr.bf16.mxu1 %v3245_v55  ;;  %v1874_v59 = vmax.f32 %v1824_v6, 0.0 }
 0x2e5   :  { %v1875_v19 = vmax.f32 %v1827_v57, 0.0  ;;  %v2705_v7 = vpop.f32.mrb[44].mxu1 }
 0x2e6   :  { %v2706_v60 = vpop.f32.mrb[45].mxu1  ;;  %2802 = vmatpush3.bf16.msra.mxu1 %v3245_v55 }
 0x2e7   :  { %v2707_v27 = vadd.f32 %v2706_v60, %v2705_v7  ;;  %v2708_v20 = vpop.f32.mrb[46].mxu1  ;;  %v1888_v28 = vpack.c.bf16 %v1875_v19, %v1874_v59  ;;  %2803 = vmatprep.subr.bf16.mxu1 %v3246_v58  ;;  %v3251_v59 = vld [vmem:[#allocation10 + $0x38] sm:$0xff]   ;;  %v2653_v19 = vld [vmem:[%s3895_s6] ss:$0 sm:$0xff] }
 0x2e8   :  { %v2709_v21 = vpop.f32.mrb[47].mxu1 }
 0x2e9   :  { %v1832_v61 = vadd.f32 %v2707_v27, %v3710_v39  ;;  %v2710_v62 = vadd.f32 %v2709_v21, %v2708_v20  ;;  %2787 = vmatprep.mubr.bf16.mxu1 %v1888_v28 }
 0x2ea   :  { %2804 = vmatpush3.bf16.msra.mxu1 %v3246_v58  ;;  %v3250_v58 = vld [vmem:[#allocation10 + $0x30] sm:$0xff]  }
 0x2eb   :  { %v1835_v9 = vadd.f32 %v2710_v62, %v3710_v39  ;;  %2805 = vmatprep.subr.bf16.mxu1 %v3247_v8  ;;  %v1876_v30 = vmax.f32 %v1832_v61, 0.0 }
 0x2ed   :  { %v1877_v63 = vmax.f32 %v1835_v9, 0.0  ;;  %v2711_v23 = vpop.f32.mrb[48].mxu1 }
 0x2ee   :  { %v2712_v33 = vpop.f32.mrb[49].mxu1  ;;  %2806 = vmatpush3.bf16.msra.mxu1 %v3247_v8 }
 0x2ef   :  { %v2713_v34 = vadd.f32 %v2712_v33, %v2711_v23  ;;  %v2714_v0 = vpop.f32.mrb[50].mxu1  ;;  %v1889_v24 = vpack.c.bf16 %v1877_v63, %v1876_v30  ;;  %2807 = vmatprep.subr.bf16.mxu1 %v3248_v29 }
 0x2f0   :  { %v2715_v35 = vpop.f32.mrb[51].mxu1 }
 0x2f1   :  { %v1840_v36 = vadd.f32 %v2713_v34, %v3710_v39  ;;  %v2716_v37 = vadd.f32 %v2715_v35, %v2714_v0  ;;  %2788 = vmatmul.mubr.bf16.gmra.mrb[68].mxu1 %v1889_v24 }
 0x2f2   :  { %2808 = vmatpush3.bf16.msra.mxu1 %v3248_v29 }
 0x2f3   :  { %v1843_v25 = vadd.f32 %v2716_v37, %v3710_v39  ;;  %2809 = vmatprep.subr.bf16.mxu1 %v3249_v10  ;;  %v1878_v31 = vmax.f32 %v1840_v36, 0.0 }
 0x2f5   :  { %v1879_v26 = vmax.f32 %v1843_v25, 0.0  ;;  %v2717_v32 = vpop.f32.mrb[52].mxu1 }
 0x2f6   :  { %v2718_v11 = vpop.f32.mrb[53].mxu1  ;;  %2810 = vmatpush3.bf16.msra.mxu1 %v3249_v10 }
 0x2f7   :  { %v2719_v38 = vadd.f32 %v2718_v11, %v2717_v32  ;;  %v2720_v1 = vpop.f32.mrb[54].mxu1  ;;  %v1890_v12 = vpack.c.bf16 %v1879_v26, %v1878_v31  ;;  %2811 = vmatprep.subr.bf16.mxu1 %v3250_v58 }
 0x2f8   :  { %v2721_v2 = vpop.f32.mrb[55].mxu1 }
 0x2f9   :  { %v1848_v40 = vadd.f32 %v2719_v38, %v3710_v39  ;;  %v2722_v13 = vadd.f32 %v2721_v2, %v2720_v1  ;;  %2791 = vmatprep.mubr.bf16.mxu1 %v1890_v12 }
 0x2fa   :  { %2812 = vmatpush3.bf16.msra.mxu1 %v3250_v58 }
 0x2fb   :  { %v1851_v41 = vadd.f32 %v2722_v13, %v3710_v39  ;;  %v1880_v42 = vmax.f32 %v1848_v40, 0.0  ;;  %2813 = vmatprep.subr.bf16.mxu1 %v3251_v59 }
 0x2fd   :  { %v1881_v43 = vmax.f32 %v1851_v41, 0.0  ;;  %v2723_v3 = vpop.f32.mrb[56].mxu1 }
 0x2fe   :  { %v2724_v44 = vpop.f32.mrb[57].mxu1  ;;  %2814 = vmatpush3.bf16.msra.mxu1 %v3251_v59 }
 0x2ff   :  { %v2725_v45 = vadd.f32 %v2724_v44, %v2723_v3  ;;  %v2726_v14 = vpop.f32.mrb[58].mxu1  ;;  %v1891_v46 = vpack.c.bf16 %v1881_v43, %v1880_v42 }
 0x300   :  { %v2727_v4 = vpop.f32.mrb[59].mxu1 }
 0x301   :  { %v1856_v47 = vadd.f32 %v2725_v45, %v3710_v39  ;;  %v2728_v15 = vadd.f32 %v2727_v4, %v2726_v14  ;;  %2792 = vmatmul.mubr.bf16.gmra.mrb[72].mxu1 %v1891_v46 }
 0x303   :  { %v1859_v48 = vadd.f32 %v2728_v15, %v3710_v39  ;;  %v1882_v49 = vmax.f32 %v1856_v47, 0.0 }
 0x305   :  { %v1883_v5 = vmax.f32 %v1859_v48, 0.0  ;;  %v2729_v16 = vpop.f32.mrb[60].mxu1 }
 0x306   :  { %v2730_v50 = vpop.f32.mrb[61].mxu1 }
 0x307   :  { %v2731_v51 = vadd.f32 %v2730_v50, %v2729_v16  ;;  %v2732_v17 = vpop.f32.mrb[62].mxu1  ;;  %v1892_v52 = vpack.c.bf16 %v1883_v5, %v1882_v49 }
 0x308   :  { %v2733_v53 = vpop.f32.mrb[63].mxu1 }
 0x309   :  { %v1864_v54 = vadd.f32 %v2731_v51, %v3710_v39  ;;  %v2734_v55 = vadd.f32 %v2733_v53, %v2732_v17  ;;  %2795 = vmatprep.mubr.bf16.mxu1 %v1892_v52 }
 0x30b   :  { %v1867_v56 = vadd.f32 %v2734_v55, %v3710_v39  ;;  %v1884_v6 = vmax.f32 %v1864_v54, 0.0 }
 0x30d   :  { %v1885_v18 = vmax.f32 %v1867_v56, 0.0  ;;  %v3732_v56 = vand.u32 127, %v280_v22 }
 0x30f   :  { %v1893_v57 = vpack.c.bf16 %v1885_v18, %v1884_v6  ;;  %v2662_v6 = vld [vmem:[%s3897_s8] ss:$0 sm:$0xff]  ;;  %vm2256_vm0 = vcmp.lt.s32.totalorder %v3732_v56, 10  ;;  %s3468_s8 = smov [#allocation11]  }
 0x310   :  { %s2454_s16 = sshll.u32 %s3468_s8, 4  ;;  %s2455_s16 = int_to_ptr.vmem [resolvable:$true] %s2454_s16 }
 0x311   :  { %2796 = vmatmul.mubr.bf16.gmra.mrb[76].mxu1 %v1893_v57  ;;  %s3426_s17 = scalar_lea.vmem %s2455_s16, 2048  ;;  %p3431_p13 = scmp.lt.s32.totalorder %s2455_s16, %s2455_s16 }
 0x312   :  { %p3427_p12 = scmp.ne.s32.totalorder %s2455_s16, %s3426_s17  ;;  %p3432_p0 = scmp.lt.s32.totalorder %s3426_s17, %s3426_s17 }
 0x314   :  { %p3433_p1 = por %p3432_p0, %p3431_p13 }
 0x316   :  { %p3434_p2 = pnand %p3433_p1, %p3427_p12 }
 0x3b4   :  { %v2785_v7 = vpop.f32.mrb[64].mxu1 }
 0x3b5   :  { %v2008_v60 = vadd.f32 %v2785_v7, %v2653_v19  ;;  %v1999_v27 = vpop.f32.mrb[65].mxu1 }
 0x3b6   :  { %v2000_v20 = vadd.f32 %v2653_v19, %v1999_v27  ;;  %v2786_v28 = vpop.f32.mrb[66].mxu1 }
 0x3b7   :  { %v2011_v39 = vadd.f32 %v2786_v28, %v2653_v19  ;;  %v2002_v8 = vpop.f32.mrb[67].mxu1  ;;  %v2064_v61 = vmax.f32 %v2008_v60, 0.0 }
 0x3b8   :  { %v2003_v21 = vadd.f32 %v2653_v19, %v2002_v8  ;;  %v2062_v9 = vmax.f32 %v2000_v20, 0.0 }
 0x3b9   :  { %v2065_v62 = vmax.f32 %v2011_v39, 0.0 }
 0x3ba   :  { %v2063_v29 = vmax.f32 %v2003_v21, 0.0 }
 0x3bb   :  { %v2079_v30 = vpack.c.bf16 %v2065_v62, %v2064_v61 }
 0x3bc   :  { %v2078_v63 = vpack.c.bf16 %v2063_v29, %v2062_v9 }
 0x3be   :  { %2815 = vmatprep.mubr.bf16.mxu1 %v2078_v63 }
 0x3bf   :  { %2816 = vmatmul.mubr.bf16.vlgmr.msra.gmra.mrb[80].mxu1 %v2079_v30 }
 0x3c4   :  { %v2789_v23 = vpop.f32.mrb[68].mxu1 }
 0x3c5   :  { %v2024_v33 = vadd.f32 %v2789_v23, %v2653_v19  ;;  %v2015_v34 = vpop.f32.mrb[69].mxu1 }
 0x3c6   :  { %v2016_v0 = vadd.f32 %v2653_v19, %v2015_v34  ;;  %v2790_v24 = vpop.f32.mrb[70].mxu1 }
 0x3c7   :  { %v2027_v10 = vadd.f32 %v2790_v24, %v2653_v19  ;;  %v2018_v35 = vpop.f32.mrb[71].mxu1  ;;  %v2068_v37 = vmax.f32 %v2024_v33, 0.0 }
 0x3c8   :  { %v2019_v36 = vadd.f32 %v2653_v19, %v2018_v35  ;;  %v2066_v31 = vmax.f32 %v2016_v0, 0.0 }
 0x3c9   :  { %v2069_v25 = vmax.f32 %v2027_v10, 0.0 }
 0x3ca   :  { %v2067_v26 = vmax.f32 %v2019_v36, 0.0 }
 0x3cb   :  { %v2081_v32 = vpack.c.bf16 %v2069_v25, %v2068_v37 }
 0x3cc   :  { %v2080_v11 = vpack.c.bf16 %v2067_v26, %v2066_v31 }
 0x3ce   :  { %2819 = vmatprep.mubr.bf16.mxu1 %v2080_v11 }
 0x3cf   :  { %2820 = vmatmul.mubr.bf16.gmra.mrb[84].mxu1 %v2081_v32 }
 0x3d4   :  { %v2793_v38 = vpop.f32.mrb[72].mxu1 }
 0x3d5   :  { %v2040_v1 = vadd.f32 %v2793_v38, %v2653_v19  ;;  %v2031_v12 = vpop.f32.mrb[73].mxu1 }
 0x3d6   :  { %v2032_v2 = vadd.f32 %v2653_v19, %v2031_v12  ;;  %v2794_v40 = vpop.f32.mrb[74].mxu1 }
 0x3d7   :  { %v2043_v13 = vadd.f32 %v2794_v40, %v2653_v19  ;;  %v2034_v41 = vpop.f32.mrb[75].mxu1  ;;  %v2072_v43 = vmax.f32 %v2040_v1, 0.0 }
 0x3d8   :  { %v2035_v42 = vadd.f32 %v2653_v19, %v2034_v41  ;;  %v2070_v44 = vmax.f32 %v2032_v2, 0.0 }
 0x3d9   :  { %v2073_v3 = vmax.f32 %v2043_v13, 0.0 }
 0x3da   :  { %v2071_v45 = vmax.f32 %v2035_v42, 0.0 }
 0x3db   :  { %v2083_v14 = vpack.c.bf16 %v2073_v3, %v2072_v43 }
 0x3dc   :  { %v2082_v46 = vpack.c.bf16 %v2071_v45, %v2070_v44 }
 0x3de   :  { %2823 = vmatprep.mubr.bf16.mxu1 %v2082_v46 }
 0x3df   :  { %2824 = vmatmul.mubr.bf16.gmra.mrb[88].mxu1 %v2083_v14 }
 0x3e4   :  { %v2797_v4 = vpop.f32.mrb[76].mxu1 }
 0x3e5   :  { %v2056_v47 = vadd.f32 %v2797_v4, %v2653_v19  ;;  %v2047_v15 = vpop.f32.mrb[77].mxu1 }
 0x3e6   :  { %v2048_v48 = vadd.f32 %v2653_v19, %v2047_v15  ;;  %v2798_v49 = vpop.f32.mrb[78].mxu1 }
 0x3e7   :  { %v2059_v5 = vadd.f32 %v2798_v49, %v2653_v19  ;;  %v2050_v16 = vpop.f32.mrb[79].mxu1  ;;  %v2076_v51 = vmax.f32 %v2056_v47, 0.0 }
 0x3e8   :  { %v2051_v50 = vadd.f32 %v2653_v19, %v2050_v16  ;;  %v2074_v52 = vmax.f32 %v2048_v48, 0.0 }
 0x3e9   :  { %v2077_v17 = vmax.f32 %v2059_v5, 0.0 }
 0x3ea   :  { %v2075_v53 = vmax.f32 %v2051_v50, 0.0 }
 0x3eb   :  { %v2085_v54 = vpack.c.bf16 %v2077_v17, %v2076_v51 }
 0x3ec   :  { %v2084_v55 = vpack.c.bf16 %v2075_v53, %v2074_v52 }
 0x3ee   :  { %2827 = vmatprep.mubr.bf16.mxu1 %v2084_v55 }
 0x3ef   :  { %2828 = vmatmul.mubr.bf16.gmra.mrb[92].mxu1 %v2085_v54 }
 0x492   :  { %v2817_v18 = vpop.f32.mrb[80].mxu1 }
 0x493   :  { %v2200_v57 = vadd.f32 %v2817_v18, %v2662_v6  ;;  %v2191_v58 = vpop.f32.mrb[81].mxu1 }
 0x494   :  { %v2192_v59 = vadd.f32 %v2662_v6, %v2191_v58  ;;  %v2818_v19 = vpop.f32.mrb[82].mxu1 }
 0x495   :  { %v2203_v7 = vadd.f32 %v2818_v19, %v2662_v6  ;;  %v2194_v60 = vpop.f32.mrb[83].mxu1  ;;  %v2259_v27 = vsel %vm2256_vm0, %v2200_v57, -1e+30 }
 0x496   :  { %v2195_v20 = vadd.f32 %v2662_v6, %v2194_v60  ;;  %2277 = vmax.xlane.f32.xlu1 %v2259_v27  ;;  %v2257_v22 = vsel %vm2256_vm0, %v2192_v59, -1e+30 }
 0x497   :  { %2273 = vmax.xlane.f32.xlu0 %v2257_v22  ;;  %v2260_v28 = vsel %vm2256_vm0, %v2203_v7, -1e+30 }
 0x498   :  { %v2258_v39 = vsel %vm2256_vm0, %v2195_v20, -1e+30 }
 0x49a   :  { %2279 = vmax.xlane.f32.xlu1 %v2260_v28 }
 0x49b   :  { %2275 = vmax.xlane.f32.xlu0 %v2258_v39 }
 0x4a2   :  { %v2821_v8 = vpop.f32.mrb[84].mxu1 }
 0x4a3   :  { %v2216_v21 = vadd.f32 %v2821_v8, %v2662_v6  ;;  %v2207_v61 = vpop.f32.mrb[85].mxu1 }
 0x4a4   :  { %v2822_v62 = vpop.f32.mrb[86].mxu1  ;;  %v2208_v9 = vadd.f32 %v2662_v6, %v2207_v61 }
 0x4a5   :  { %v2219_v29 = vadd.f32 %v2822_v62, %v2662_v6  ;;  %v2210_v30 = vpop.f32.mrb[87].mxu1  ;;  %v2263_v63 = vsel %vm2256_vm0, %v2216_v21, -1e+30 }
 0x4a6   :  { %2285 = vmax.xlane.f32.xlu0 %v2263_v63  ;;  %v2211_v23 = vadd.f32 %v2662_v6, %v2210_v30  ;;  %v3752_v34 = vsel %vm2256_vm0, %v2208_v9, -1e+30 }
 0x4a7   :  { %v2264_v33 = vsel %vm2256_vm0, %v2219_v29, -1e+30 }
 0x4a8   :  { %2287 = vmax.xlane.f32.xlu1 %v2264_v33  ;;  %v3757_v0 = vsel %vm2256_vm0, %v2211_v23, -1e+30 }
 0x4aa   :  { %2281 = vmax.xlane.f32.xlu0 %v3752_v34 }
 0x4ac   :  { %2283 = vmax.xlane.f32.xlu1 %v3757_v0 }
 0x4b2   :  { %v2825_v24 = vpop.f32.mrb[88].mxu1 }
 0x4b3   :  { %v2232_v10 = vadd.f32 %v2825_v24, %v2662_v6  ;;  %v2223_v35 = vpop.f32.mrb[89].mxu1 }
 0x4b4   :  { %v2826_v36 = vpop.f32.mrb[90].mxu1  ;;  %v2224_v37 = vadd.f32 %v2662_v6, %v2223_v35 }
 0x4b5   :  { %v2235_v25 = vadd.f32 %v2826_v36, %v2662_v6  ;;  %v2226_v31 = vpop.f32.mrb[91].mxu1  ;;  %v3762_v26 = vsel %vm2256_vm0, %v2232_v10, -1e+30 }
 0x4b6   :  { %2293 = vmax.xlane.f32.xlu0 %v3762_v26  ;;  %v2227_v32 = vadd.f32 %v2662_v6, %v2226_v31  ;;  %v3772_v38 = vsel %vm2256_vm0, %v2224_v37, -1e+30 }
 0x4b7   :  { %v3767_v11 = vsel %vm2256_vm0, %v2235_v25, -1e+30 }
 0x4b8   :  { %2295 = vmax.xlane.f32.xlu1 %v3767_v11  ;;  %v3777_v1 = vsel %vm2256_vm0, %v2227_v32, -1e+30 }
 0x4ba   :  { %2289 = vmax.xlane.f32.xlu0 %v3772_v38 }
 0x4bc   :  { %2291 = vmax.xlane.f32.xlu1 %v3777_v1 }
 0x4c2   :  { %v2829_v12 = vpop.f32.mrb[92].mxu1 }
 0x4c3   :  { %v2239_v2 = vpop.f32.mrb[93].mxu1  ;;  %v2248_v42 = vadd.f32 %v2829_v12, %v2662_v6 }
 0x4c4   :  { %v2240_v40 = vadd.f32 %v2662_v6, %v2239_v2  ;;  %v2830_v13 = vpop.f32.mrb[94].mxu1 }
 0x4c5   :  { %v2242_v41 = vpop.f32.mrb[95].mxu1  ;;  %v2251_v44 = vadd.f32 %v2830_v13, %v2662_v6  ;;  %v3792_v14 = vsel %vm2256_vm0, %v2248_v42, -1e+30 }
 0x4c6   :  { %v2243_v43 = vadd.f32 %v2662_v6, %v2242_v41  ;;  %v3782_v3 = vsel %vm2256_vm0, %v2240_v40, -1e+30 }
 0x4c7   :  { %2297 = vmax.xlane.f32.xlu0 %v3782_v3  ;;  %v3797_v46 = vsel %vm2256_vm0, %v2251_v44, -1e+30 }
 0x4c8   :  { %v3787_v45 = vsel %vm2256_vm0, %v2243_v43, -1e+30 }
 0x4c9   :  { %2299 = vmax.xlane.f32.xlu1 %v3787_v45 }
 0x4cb   :  { %2301 = vmax.xlane.f32.xlu0 %v3792_v14 }
 0x4cd   :  { %2303 = vmax.xlane.f32.xlu1 %v3797_v46 }
 0x523   :  { %v2278_v4 = vpop.xlane.xlu1 %2277 }
 0x524   :  { %v3800_v47 = vsub.f32 %v2259_v27, %v2278_v4  ;;  %v2274_v15 = vpop.xlane.xlu0 %2273 }
 0x525   :  { %v3802_v48 = vsub.f32 %v2257_v22, %v2274_v15 }
 0x526   :  { %v2325_v49 = vmul.f32 1.442695, %v3800_v47 }
 0x527   :  { %v2321_v5 = vmul.f32 1.442695, %v3802_v48  ;;  %v2280_v16 = vpop.xlane.xlu1 %2279 }
 0x528   :  { %3252 = vpow2.f32 %v2325_v49  ;;  %v3806_v50 = vsub.f32 %v2260_v28, %v2280_v16  ;;  %v2276_v51 = vpop.xlane.xlu0 %2275 }
 0x529   :  { %v3808_v17 = vsub.f32 %v2258_v39, %v2276_v51  ;;  %3254 = vpow2.f32 %v2321_v5 }
 0x52a   :  { %v2327_v52 = vmul.f32 1.442695, %v3806_v50 }
 0x52b   :  { %v2323_v53 = vmul.f32 1.442695, %v3808_v17 }
 0x52c   :  { %3256 = vpow2.f32 %v2327_v52 }
 0x52d   :  { %3258 = vpow2.f32 %v2323_v53 }
 0x532   :  { %v3253_v54 = vpop.eup %3252 }
 0x533   :  { %2357 = vadd.xlane.f32.xlu0 %v3253_v54  ;;  %v2286_v55 = vpop.xlane.xlu0 %2285  ;;  %v3255_v6 = vpop.eup %3254 }
 0x534   :  { %v3812_v56 = vsub.f32 %v2263_v63, %v2286_v55 }
 0x535   :  { %v2288_v18 = vpop.xlane.xlu1 %2287 }
 0x536   :  { %v3257_v57 = vpop.eup %3256  ;;  %v2333_v58 = vmul.f32 1.442695, %v3812_v56  ;;  %v3815_v59 = vsub.f32 %v2264_v33, %v2288_v18 }
 0x537   :  { %2359 = vadd.xlane.f32.xlu1 %v3257_v57  ;;  %2353 = vadd.xlane.f32.xlu0 %v3255_v6  ;;  %v2282_v19 = vpop.xlane.xlu0 %2281  ;;  %v3259_v20 = vpop.eup %3258 }
 0x538   :  { %3260 = vpow2.f32 %v2333_v58  ;;  %v2335_v7 = vmul.f32 1.442695, %v3815_v59  ;;  %v3819_v60 = vsub.f32 %v3752_v34, %v2282_v19 }
 0x539   :  { %v2284_v27 = vpop.xlane.xlu1 %2283 }
 0x53a   :  { %3262 = vpow2.f32 %v2335_v7  ;;  %v2329_v22 = vmul.f32 1.442695, %v3819_v60  ;;  %v3823_v28 = vsub.f32 %v3757_v0, %v2284_v27 }
 0x53b   :  { %2355 = vadd.xlane.f32.xlu1 %v3259_v20 }
 0x53c   :  { %3264 = vpow2.f32 %v2329_v22  ;;  %v2331_v39 = vmul.f32 1.442695, %v3823_v28 }
 0x53e   :  { %3266 = vpow2.f32 %v2331_v39 }
 0x542   :  { %v3261_v8 = vpop.eup %3260 }
 0x543   :  { %2365 = vadd.xlane.f32.xlu0 %v3261_v8  ;;  %v2294_v21 = vpop.xlane.xlu0 %2293 }
 0x544   :  { %v3263_v61 = vpop.eup %3262  ;;  %v3827_v62 = vsub.f32 %v3762_v26, %v2294_v21 }
 0x545   :  { %v2296_v9 = vpop.xlane.xlu1 %2295  ;;  %2367 = vadd.xlane.f32.xlu1 %v3263_v61 }
 0x546   :  { %v3265_v29 = vpop.eup %3264  ;;  %v2341_v30 = vmul.f32 1.442695, %v3827_v62  ;;  %v3831_v63 = vsub.f32 %v3767_v11, %v2296_v9 }
 0x547   :  { %2361 = vadd.xlane.f32.xlu0 %v3265_v29  ;;  %v2290_v23 = vpop.xlane.xlu0 %2289 }
 0x548   :  { %v3267_v33 = vpop.eup %3266  ;;  %3268 = vpow2.f32 %v2341_v30  ;;  %v2343_v34 = vmul.f32 1.442695, %v3831_v63  ;;  %v3835_v0 = vsub.f32 %v3772_v38, %v2290_v23 }
 0x549   :  { %v2292_v24 = vpop.xlane.xlu1 %2291  ;;  %2363 = vadd.xlane.f32.xlu1 %v3267_v33 }
 0x54a   :  { %3270 = vpow2.f32 %v2343_v34  ;;  %v2337_v10 = vmul.f32 1.442695, %v3835_v0  ;;  %v3839_v35 = vsub.f32 %v3777_v1, %v2292_v24 }
 0x54c   :  { %3272 = vpow2.f32 %v2337_v10  ;;  %v2339_v36 = vmul.f32 1.442695, %v3839_v35 }
 0x54e   :  { %3274 = vpow2.f32 %v2339_v36 }
 0x552   :  { %v3269_v37 = vpop.eup %3268 }
 0x553   :  { %2373 = vadd.xlane.f32.xlu0 %v3269_v37 }
 0x554   :  { %v3271_v25 = vpop.eup %3270  ;;  %v2298_v31 = vpop.xlane.xlu0 %2297 }
 0x555   :  { %v3843_v26 = vsub.f32 %v3782_v3, %v2298_v31  ;;  %2375 = vadd.xlane.f32.xlu1 %v3271_v25 }
 0x556   :  { %v3273_v32 = vpop.eup %3272  ;;  %v2300_v11 = vpop.xlane.xlu1 %2299 }
 0x557   :  { %v2345_v38 = vmul.f32 1.442695, %v3843_v26  ;;  %v3847_v12 = vsub.f32 %v3787_v45, %v2300_v11  ;;  %2369 = vadd.xlane.f32.xlu0 %v3273_v32 }
 0x558   :  { %v3275_v1 = vpop.eup %3274  ;;  %v2302_v2 = vpop.xlane.xlu0 %2301 }
 0x559   :  { %3276 = vpow2.f32 %v2345_v38  ;;  %v2347_v40 = vmul.f32 1.442695, %v3847_v12  ;;  %v3851_v13 = vsub.f32 %v3792_v14, %v2302_v2  ;;  %2371 = vadd.xlane.f32.xlu1 %v3275_v1 }
 0x55a   :  { %v2304_v41 = vpop.xlane.xlu1 %2303 }
 0x55b   :  { %3278 = vpow2.f32 %v2347_v40  ;;  %v2349_v42 = vmul.f32 1.442695, %v3851_v13  ;;  %v3855_v43 = vsub.f32 %v3797_v46, %v2304_v41 }
 0x55d   :  { %3280 = vpow2.f32 %v2349_v42  ;;  %v2351_v3 = vmul.f32 1.442695, %v3855_v43 }
 0x55f   :  { %3282 = vpow2.f32 %v2351_v3 }
 0x563   :  { %v3277_v44 = vpop.eup %3276 }
 0x564   :  { %2377 = vadd.xlane.f32.xlu0 %v3277_v44 }
 0x565   :  { %v3279_v45 = vpop.eup %3278 }
 0x566   :  { %2379 = vadd.xlane.f32.xlu1 %v3279_v45 }
 0x567   :  { %v3281_v4 = vpop.eup %3280 }
 0x568   :  { %2381 = vadd.xlane.f32.xlu0 %v3281_v4 }
 0x569   :  { %v3283_v14 = vpop.eup %3282 }
 0x56a   :  { %2383 = vadd.xlane.f32.xlu1 %v3283_v14 }
 0x5c0   :  { %v2358_v15 = vpop.xlane.xlu0 %2357 }
 0x5c1   :  { %3284 = vlog2.f32 %v2358_v15 }
 0x5c4   :  { %v2360_v49 = vpop.xlane.xlu1 %2359  ;;  %v2354_v5 = vpop.xlane.xlu0 %2353 }
 0x5c5   :  { %3286 = vlog2.f32 %v2360_v49 }
 0x5c6   :  { %3288 = vlog2.f32 %v2354_v5 }
 0x5c8   :  { %v2356_v46 = vpop.xlane.xlu1 %2355 }
 0x5c9   :  { %3290 = vlog2.f32 %v2356_v46 }
 0x5cb   :  { %v3285_v16 = vpop.eup %3284 }
 0x5cc   :  { %v2390_v51 = vmul.f32 0.6931472, %v3285_v16 }
 0x5ce   :  { %v2419_v52 = vsub.f32 %v3800_v47, %v2390_v51 }
 0x5cf   :  { %v3287_v53 = vpop.eup %3286 }
 0x5d0   :  { %v3289_v54 = vpop.eup %3288  ;;  %2435 = vst [vmem:[#allocation11 + $0x10] sm:$0xff] %v2419_v52  ;;  %v2392_v55 = vmul.f32 0.6931472, %v3287_v53  ;;  %v2366_v6 = vpop.xlane.xlu0 %2365 }
 0x5d1   :  { %v2386_v18 = vmul.f32 0.6931472, %v3289_v54  ;;  %3292 = vlog2.f32 %v2366_v6 }
 0x5d2   :  { %v2420_v57 = vsub.f32 %v3806_v50, %v2392_v55  ;;  %v2368_v58 = vpop.xlane.xlu1 %2367 }
 0x5d3   :  { %v3291_v19 = vpop.eup %3290  ;;  %v2417_v7 = vsub.f32 %v3802_v48, %v2386_v18  ;;  %3294 = vlog2.f32 %v2368_v58 }
 0x5d4   :  { %2436 = vst [vmem:[#allocation11 + $0x18] sm:$0xff] %v2420_v57  ;;  %v2388_v27 = vmul.f32 0.6931472, %v3291_v19  ;;  %v2362_v20 = vpop.xlane.xlu0 %2361 }
 0x5d5   :  { %2433 = vst [vmem:[#allocation11] sm:$0xff] %v2417_v7  ;;  %3296 = vlog2.f32 %v2362_v20 }
 0x5d6   :  { %v2418_v47 = vsub.f32 %v3808_v17, %v2388_v27  ;;  %v2364_v22 = vpop.xlane.xlu1 %2363 }
 0x5d7   :  { %3298 = vlog2.f32 %v2364_v22 }
 0x5d8   :  { %2434 = vst [vmem:[#allocation11 + $0x8] sm:$0xff] %v2418_v47 }
 0x5db   :  { %v3293_v39 = vpop.eup %3292 }
 0x5dc   :  { %v2398_v8 = vmul.f32 0.6931472, %v3293_v39 }
 0x5dd   :  { %v3295_v21 = vpop.eup %3294 }
 0x5de   :  { %v2423_v50 = vsub.f32 %v3812_v56, %v2398_v8  ;;  %v2400_v61 = vmul.f32 0.6931472, %v3295_v21 }
 0x5df   :  { %v3297_v9 = vpop.eup %3296 }
 0x5e0   :  { %2439 = vst [vmem:[#allocation11 + $0x30] sm:$0xff] %v2423_v50  ;;  %v2424_v48 = vsub.f32 %v3815_v59, %v2400_v61  ;;  %v2394_v29 = vmul.f32 0.6931472, %v3297_v9  ;;  %v2374_v30 = vpop.xlane.xlu0 %2373 }
 0x5e1   :  { %v3299_v23 = vpop.eup %3298  ;;  %3300 = vlog2.f32 %v2374_v30 }
 0x5e2   :  { %2440 = vst [vmem:[#allocation11 + $0x38] sm:$0xff] %v2424_v48  ;;  %v2421_v17 = vsub.f32 %v3819_v60, %v2394_v29  ;;  %v2396_v33 = vmul.f32 0.6931472, %v3299_v23  ;;  %v2376_v34 = vpop.xlane.xlu1 %2375 }
 0x5e3   :  { %3302 = vlog2.f32 %v2376_v34 }
 0x5e4   :  { %2437 = vst [vmem:[#allocation11 + $0x20] sm:$0xff] %v2421_v17  ;;  %v2422_v24 = vsub.f32 %v3823_v28, %v2396_v33  ;;  %v2370_v10 = vpop.xlane.xlu0 %2369 }
 0x5e5   :  { %3304 = vlog2.f32 %v2370_v10 }
 0x5e6   :  { %2438 = vst [vmem:[#allocation11 + $0x28] sm:$0xff] %v2422_v24  ;;  %v2372_v56 = vpop.xlane.xlu1 %2371 }
 0x5e7   :  { %3306 = vlog2.f32 %v2372_v56 }
 0x5eb   :  { %v3301_v36 = vpop.eup %3300 }
 0x5ec   :  { %v2406_v59 = vmul.f32 0.6931472, %v3301_v36 }
 0x5ed   :  { %v3303_v37 = vpop.eup %3302 }
 0x5ee   :  { %v2427_v25 = vsub.f32 %v3827_v62, %v2406_v59  ;;  %v2408_v31 = vmul.f32 0.6931472, %v3303_v37 }
 0x5ef   :  { %v3305_v32 = vpop.eup %3304 }
 0x5f0   :  { %2443 = vst [vmem:[#allocation11 + $0x50] sm:$0xff] %v2427_v25  ;;  %v2428_v60 = vsub.f32 %v3831_v63, %v2408_v31  ;;  %v2402_v11 = vmul.f32 0.6931472, %v3305_v32 }
 0x5f1   :  { %v3307_v38 = vpop.eup %3306  ;;  %v2378_v1 = vpop.xlane.xlu0 %2377 }
 0x5f2   :  { %2444 = vst [vmem:[#allocation11 + $0x58] sm:$0xff] %v2428_v60  ;;  %v2425_v28 = vsub.f32 %v3835_v0, %v2402_v11  ;;  %v2404_v2 = vmul.f32 0.6931472, %v3307_v38  ;;  %3308 = vlog2.f32 %v2378_v1 }
 0x5f3   :  { %v2380_v40 = vpop.xlane.xlu1 %2379 }
 0x5f4   :  { %2441 = vst [vmem:[#allocation11 + $0x40] sm:$0xff] %v2425_v28  ;;  %v2426_v41 = vsub.f32 %v3839_v35, %v2404_v2  ;;  %3310 = vlog2.f32 %v2380_v40 }
 0x5f5   :  { %v2382_v42 = vpop.xlane.xlu0 %2381 }
 0x5f6   :  { %2442 = vst [vmem:[#allocation11 + $0x48] sm:$0xff] %v2426_v41  ;;  %3312 = vlog2.f32 %v2382_v42 }
 0x5f7   :  { %v2384_v62 = vpop.xlane.xlu1 %2383 }
 0x5f8   :  { %3314 = vlog2.f32 %v2384_v62 }
 0x5fc   :  { %v3309_v3 = vpop.eup %3308 }
 0x5fd   :  { %v2410_v63 = vmul.f32 0.6931472, %v3309_v3 }
 0x5fe   :  { %v3311_v44 = vpop.eup %3310 }
 0x5ff   :  { %v2429_v45 = vsub.f32 %v3843_v26, %v2410_v63  ;;  %v2412_v4 = vmul.f32 0.6931472, %v3311_v44 }
 0x600   :  { %v3313_v14 = vpop.eup %3312 }
 0x601   :  { %2445 = vst [vmem:[#allocation11 + $0x60] sm:$0xff] %v2429_v45  ;;  %v2430_v0 = vsub.f32 %v3847_v12, %v2412_v4  ;;  %v2414_v15 = vmul.f32 0.6931472, %v3313_v14 }
 0x602   :  { %v3315_v49 = vpop.eup %3314 }
 0x603   :  { %2446 = vst [vmem:[#allocation11 + $0x68] sm:$0xff] %v2430_v0  ;;  %v2431_v35 = vsub.f32 %v3851_v13, %v2414_v15  ;;  %v2416_v5 = vmul.f32 0.6931472, %v3315_v49 }
 0x605   :  { %2447 = vst [vmem:[#allocation11 + $0x70] sm:$0xff] %v2431_v35  ;;  %v2432_v46 = vsub.f32 %v3855_v43, %v2416_v5 }
 0x607   :  { %2448 = vst [vmem:[#allocation11 + $0x78] sm:$0xff] %v2432_v46 }
 0x608   :  { %3437 = shalt.err (!%p3434_p2)
}
 0x609   :  { %s3438_s22 = scalar_lea.hbm %s3898_s9, 2048 }
 0x60a   :  { %p3439_p3 = scmp.ne.s32.totalorder %s3898_s9, %s3438_s22  ;;  %p3442_p4 = scmp.lt.u32.totalorder %s3438_s22, %s3898_s9 }
 0x60c   :  { %p3444_p5 = pnand %p3442_p4, %p3439_p3 }
 0x60e   :  { %3447 = shalt.err (!%p3444_p5)
}
 0x60f   :  { %2460 = dma.vmem_to_hbm [thread:$0]  %s2455_s16, 2048, %s3898_s9, [#allocation4], %s3457_s19, %s3457_s19, %s3458_s20  }
 0x610   :  { %3454 = dma.done.wait [#allocation4], 2048  }
 0x611   :  { %3455 = vsyncadd [#allocation4], 4294965248 }
 0x612   :  { %2464 = vsyncpa [#allocation3], 1 }
 0x613   :  { %2465 = vsyncpa [#allocation6], 1 }
 0x614   :  { %2466 = vsyncpa [#allocation9], 1 }
 0x615   :  { %2467 = vsyncpa [#allocation4], 1 }

</bundles_post_ra>
